<compile_context>
chip_gen: v7x
topology: tpu7x:2x2x1
jax: 0.10.0
libtpu: 0.0.40
codegen_flags: <defaults>
</compile_context>

<pallas_src>
import jax
import jax.numpy as jnp
from jax.experimental import pallas as pl
from jax.experimental.pallas import tpu as pltpu

# Problem sizes implied by the module: Conv1d(256, 512, 3, stride=1, padding=1, dilation=2).
C_IN = 256
C_OUT = 512
L_IN = 64
KSIZE = 3
DILATION = 2
PADDING = 1
L_OUT = (L_IN + 2 * PADDING - DILATION * (KSIZE - 1) - 1) + 1   # 62 valid outputs


def conv1d_silu_kernel(x_ref, w_ref, b_ref, o_ref):
    """x_ref : (1, C_IN, L_IN)   f32   original module layout
       w_ref : (C_OUT, K*C_IN)   bf16  flattened taps: w2[o, k*C_IN + i] = w[o, i, k]
       b_ref : (C_OUT, 1)        f32   bias column (broadcast over lanes)
       o_ref : (1, C_OUT, L_OUT) f32   output in the module layout."""
    # In-kernel bf16 cast of the activations (was a separate XLA op before).
    x_bf = x_ref[0].astype(jnp.bfloat16)                         # (C_IN, L_IN)

    # Build the three dilated taps as lane-shifted copies of x.
    # Output column l of tap k reads input column (l + k*DILATION - PADDING).
    zero1 = jnp.zeros((C_IN, 1), jnp.bfloat16)
    zero3 = jnp.zeros((C_IN, 3), jnp.bfloat16)
    t0 = jnp.concatenate([zero1, x_bf[:, : L_IN - 1]], axis=1)   # col l -> x[l-1] (l=0 is pad)
    t1 = jnp.concatenate([x_bf[:, 1:], zero1], axis=1)           # col l -> x[l+1] (l=63 is pad)
    t2 = jnp.concatenate([x_bf[:, 3:], zero3], axis=1)           # col l -> x[l+3] (l>=61 is pad)

    # Three accumulated MXU matmuls, f32 accumulation (no im2col scratch needed).
    acc = jnp.dot(w_ref[:, 0 * C_IN:1 * C_IN], t0, preferred_element_type=jnp.float32)
    acc = acc + jnp.dot(w_ref[:, 1 * C_IN:2 * C_IN], t1, preferred_element_type=jnp.float32)
    acc = acc + jnp.dot(w_ref[:, 2 * C_IN:3 * C_IN], t2, preferred_element_type=jnp.float32)

    acc = acc + b_ref[...]                                       # bias broadcast over lanes
    y = acc * jax.nn.sigmoid(acc)                                # SiLU: v1 * sigmoid(v1)
    # Columns 62/63 correspond to positions past the valid conv output; drop them here
    # so no post-kernel slice/transpose op is needed.
    o_ref[0] = y[:, :L_OUT]


def prepare_params(w, b):
    """One-time parameter prep (hoisted out of the per-call path).
    w: (C_OUT, C_IN, K) f32 -> (C_OUT, K*C_IN) bf16 with w2[o, k*C_IN+i] = w[o, i, k];
    b: (C_OUT,) f32 -> (C_OUT, 1) f32."""
    w2 = jnp.transpose(w, (0, 2, 1)).reshape(C_OUT, KSIZE * C_IN).astype(jnp.bfloat16)
    b_col = b.astype(jnp.float32).reshape(C_OUT, 1)
    return w2, b_col


@jax.jit
def conv1d_silu(x, w2, b_col):
    """x: (1, C_IN, L_IN) f32. Returns (1, C_OUT, L_OUT) f32. No flanking XLA ops."""
    return pl.pallas_call(
        conv1d_silu_kernel,
        out_shape=jax.ShapeDtypeStruct((1, C_OUT, L_OUT), jnp.float32),
        in_specs=[
            pl.BlockSpec(memory_space=pltpu.MemorySpace.VMEM),
            pl.BlockSpec(memory_space=pltpu.MemorySpace.VMEM),
            pl.BlockSpec(memory_space=pltpu.MemorySpace.VMEM),
        ],
        out_specs=pl.BlockSpec(memory_space=pltpu.MemorySpace.VMEM),
    )(x, w2, b_col)


def _reference(x, w, b):
    """Pure-JAX reference using lax.conv_general_dilated (NCL layout), f32."""
    y = jax.lax.conv_general_dilated(
        x, w,
        window_strides=(1,),
        padding=[(PADDING, PADDING)],
        rhs_dilation=(DILATION,),
        dimension_numbers=("NCH", "OIH", "NCH"),
        precision=jax.lax.Precision.HIGHEST,
    ) + b.reshape(1, C_OUT, 1)
    return y * jax.nn.sigmoid(y)


if __name__ == "__main__":
    key = jax.random.PRNGKey(0)
    kx, kw, kb = jax.random.split(key, 3)

    # Deterministic synthetic tensors (shapes from Conv1d(256, 512, 3) acting on (1, 256, 64)).
    x = jax.random.normal(kx, (1, C_IN, L_IN), dtype=jnp.float32)
    w = jax.random.normal(kw, (C_OUT, C_IN, KSIZE), dtype=jnp.float32) * 0.02
    b = jax.random.normal(kb, (C_OUT,), dtype=jnp.float32) * 0.02

    w2, b_col = prepare_params(w, b)
    out = conv1d_silu(x, w2, b_col)
    jax.block_until_ready(out)

    assert out.shape == (1, C_OUT, L_OUT), out.shape

    # Tight check against a reference fed the same bf16-rounded operands
    # (verifies tap indexing / weight flattening / bias / SiLU exactly).
    ref_q = _reference(x.astype(jnp.bfloat16).astype(jnp.float32),
                       w.astype(jnp.bfloat16).astype(jnp.float32), b)
    assert jnp.allclose(out, ref_q, atol=2e-3, rtol=2e-3), "mismatch vs bf16-quantized reference"

    # Loose check against the full-f32 reference (bf16 weight/activation rounding only).
    ref = _reference(x, w, b)
    assert jnp.allclose(out, ref, atol=3e-2, rtol=3e-2), "mismatch vs f32 reference"

    print("KERNEL_OK")
</pallas_src>

<mosaic_0001>
module attributes {stable_mosaic.version = 11 : i64} {
  func.func @conv1d_silu_kernel(%arg0: memref<1x256x64xf32, #tpu.memory_space<vmem>>, %arg1: memref<512x768xbf16, #tpu.memory_space<vmem>>, %arg2: memref<512x1xf32, #tpu.memory_space<vmem>>, %arg3: memref<1x512x62xf32, #tpu.memory_space<vmem>>) attributes {dimension_semantics = [], scalar_prefetch = 0 : i64, scratch_operands = 0 : i64, tpu.core_type = #tpu.core_type<tc>} {
    %c0 = arith.constant 0 : index
    %c0_0 = arith.constant 0 : index
    %c0_1 = arith.constant 0 : index
    %0 = vector.load %arg0[%c0, %c0_0, %c0_1] : memref<1x256x64xf32, #tpu.memory_space<vmem>>, vector<1x256x64xf32>
    %1 = vector.shape_cast %0 : vector<1x256x64xf32> to vector<256x64xf32>
    %2 = arith.truncf %1 : vector<256x64xf32> to vector<256x64xbf16>
    %cst = arith.constant 0.000000e+00 : bf16
    %3 = vector.broadcast %cst : bf16 to vector<256x1xbf16>
    %cst_2 = arith.constant 0.000000e+00 : bf16
    %4 = vector.broadcast %cst_2 : bf16 to vector<256x3xbf16>
    %5 = vector.extract_strided_slice %2 {offsets = [0, 0], sizes = [256, 63], strides = [1, 1]} : vector<256x64xbf16> to vector<256x63xbf16>
    %6 = tpu.concatenate %3, %5 in 1 : vector<256x1xbf16>, vector<256x63xbf16> -> vector<256x64xbf16>
    %7 = vector.extract_strided_slice %2 {offsets = [0, 1], sizes = [256, 63], strides = [1, 1]} : vector<256x64xbf16> to vector<256x63xbf16>
    %8 = tpu.concatenate %7, %3 in 1 : vector<256x63xbf16>, vector<256x1xbf16> -> vector<256x64xbf16>
    %9 = vector.extract_strided_slice %2 {offsets = [0, 3], sizes = [256, 61], strides = [1, 1]} : vector<256x64xbf16> to vector<256x61xbf16>
    %10 = tpu.concatenate %9, %4 in 1 : vector<256x61xbf16>, vector<256x3xbf16> -> vector<256x64xbf16>
    %c0_3 = arith.constant 0 : index
    %c0_4 = arith.constant 0 : index
    %11 = vector.load %arg1[%c0_3, %c0_4] : memref<512x768xbf16, #tpu.memory_space<vmem>>, vector<512x256xbf16>
    %cst_5 = arith.constant dense<0.000000e+00> : vector<512x64xf32>
    %12 = tpu.matmul %11, %6, %cst_5 {dimension_numbers = #tpu.dot_dimension_numbers<[1], [0], [0], [1], [0, 0, 1, 1], [], []>} : vector<512x256xbf16>, vector<256x64xbf16>, vector<512x64xf32> -> vector<512x64xf32>
    %c0_6 = arith.constant 0 : index
    %c256 = arith.constant 256 : index
    %13 = vector.load %arg1[%c0_6, %c256] : memref<512x768xbf16, #tpu.memory_space<vmem>>, vector<512x256xbf16>
    %cst_7 = arith.constant dense<0.000000e+00> : vector<512x64xf32>
    %14 = tpu.matmul %13, %8, %cst_7 {dimension_numbers = #tpu.dot_dimension_numbers<[1], [0], [0], [1], [0, 0, 1, 1], [], []>} : vector<512x256xbf16>, vector<256x64xbf16>, vector<512x64xf32> -> vector<512x64xf32>
    %15 = arith.addf %12, %14 : vector<512x64xf32>
    %c0_8 = arith.constant 0 : index
    %c512 = arith.constant 512 : index
    %16 = vector.load %arg1[%c0_8, %c512] : memref<512x768xbf16, #tpu.memory_space<vmem>>, vector<512x256xbf16>
    %cst_9 = arith.constant dense<0.000000e+00> : vector<512x64xf32>
    %17 = tpu.matmul %16, %10, %cst_9 {dimension_numbers = #tpu.dot_dimension_numbers<[1], [0], [0], [1], [0, 0, 1, 1], [], []>} : vector<512x256xbf16>, vector<256x64xbf16>, vector<512x64xf32> -> vector<512x64xf32>
    %18 = arith.addf %15, %17 : vector<512x64xf32>
    %c0_10 = arith.constant 0 : index
    %c0_11 = arith.constant 0 : index
    %19 = vector.load %arg2[%c0_10, %c0_11] : memref<512x1xf32, #tpu.memory_space<vmem>>, vector<512x1xf32>
    %20 = vector.broadcast %19 : vector<512x1xf32> to vector<512x64xf32>
    %21 = arith.addf %18, %20 : vector<512x64xf32>
    %22 = arith.negf %21 : vector<512x64xf32>
    %23 = math.exp %22 : vector<512x64xf32>
    %cst_12 = arith.constant 1.000000e+00 : f32
    %24 = vector.broadcast %cst_12 : f32 to vector<512x64xf32>
    %25 = arith.addf %24, %23 : vector<512x64xf32>
    %26 = arith.divf %24, %25 : vector<512x64xf32>
    %27 = arith.mulf %21, %26 : vector<512x64xf32>
    %28 = vector.extract_strided_slice %27 {offsets = [0, 0], sizes = [512, 62], strides = [1, 1]} : vector<512x64xf32> to vector<512x62xf32>
    %c0_13 = arith.constant 0 : index
    %c0_14 = arith.constant 0 : index
    %c0_15 = arith.constant 0 : index
    %29 = vector.load %arg3[%c0_13, %c0_14, %c0_15] : memref<1x512x62xf32, #tpu.memory_space<vmem>>, vector<1x512x62xf32>
    %30 = vector.shape_cast %29 : vector<1x512x62xf32> to vector<512x62xf32>
    %31 = vector.shape_cast %28 : vector<512x62xf32> to vector<1x512x62xf32>
    tpu.vector_store %arg3[%c0_13, %c0_14, %c0_15], %31 {strides = array<i32>} : memref<1x512x62xf32, #tpu.memory_space<vmem>>, vector<1x512x62xf32>,
    return
  }
}

</mosaic_0001>

<bundles_post_ra>
// kernel: conv1d_silu.1
= control target key start
LH: loop header
LB: loop body
LE: loop exit
PB: predicated region body
PF: predicated region fallthrough
CT: control target
= control target key end

     0   :  { %8 = vsyncpa [#allocation3], 0  ;;  %s4281_s12 = smov [#allocation2]   ;;  %s5499_s0 = inlined_call_operand.vmem [shape: f32[1,256,64], index: 0, kind: input, shape index: {}]   ;;  %s5500_s1 = inlined_call_operand.hbm [shape: bf16[512,768], index: 1, kind: input, shape index: {}]   ;;  %s5501_s2 = inlined_call_operand.vmem [shape: f32[512,1], index: 2, kind: input, shape index: {}]   ;;  %s5502_s3 = inlined_call_operand.vmem [shape: f32[1,512,62], index: 3, kind: output, shape index: {}]  }
   0x1   :  { %s16_s13 = sshll.u32 %s4281_s12, 4  ;;  %s4257_s16 = scalar_lea.hbm %s5500_s1, 24576  ;;  %s17_s13 = int_to_ptr.vmem [resolvable:$true] %s16_s13 }
   0x2   :  { %p4258_p0 = scmp.ne.s32.totalorder %s5500_s1, %s4257_s16  ;;  %p4261_p1 = scmp.lt.u32.totalorder %s4257_s16, %s5500_s1 }
   0x4   :  { %p4263_p2 = pnand %p4261_p1, %p4258_p0 }
   0x6   :  { %4266 = shalt.err (!%p4263_p2)
}
   0x7   :  { %s4267_s21 = scalar_lea.vmem %s17_s13, 24576  ;;  %p4272_p4 = scmp.lt.s32.totalorder %s17_s13, %s17_s13 }
   0x8   :  { %p4268_p3 = scmp.ne.s32.totalorder %s17_s13, %s4267_s21  ;;  %p4273_p5 = scmp.lt.s32.totalorder %s4267_s21, %s4267_s21 }
   0xa   :  { %p4274_p6 = por %p4273_p5, %p4272_p4 }
   0xc   :  { %p4275_p7 = pnand %p4274_p6, %p4268_p3 }
   0xe   :  { %4278 = shalt.err (!%p4275_p7)
}
   0xf   :  { %s4282_s22 = smov 384   ;;  %s4283_s23 = smov 24  }
  0x10   :  { %22 = dma.hbm_to_vmem [thread:$0]  %s5500_s1, 24576, %s17_s13, [#allocation3], %s4282_s22, %s4282_s22, %s4283_s23  }
  0x11   :  { %4279 = dma.done.wait [#allocation3], 24576  }
  0x12   :  { %4280 = vsyncadd [#allocation3], 4294942720  ;;  %v4284_v0 = vmov 0   ;;  %v29_v1 = vld [vmem:[%s5499_s0] sm:$0xff]  ;;  %v30_v2 = vld [vmem:[%s5499_s0 + $0x8] sm:$0xff]  ;;  %s4285_s14 = smov 127  }
  0x13   :  { %785 = vmatprep.subr.bf16.mxu0 %v4284_v0  ;;  %3674 = vmatprep.subr.bf16.mxu1 %v4284_v0  ;;  %v31_v3 = vld [vmem:[%s5499_s0 + $0x10] sm:$0xff]  ;;  %v4333_v4 = vpack.c.bf16 %v30_v2, %v29_v1  ;;  %v32_v5 = vld [vmem:[%s5499_s0 + $0x18] sm:$0xff]  ;;  %v33_v6 = vld [vmem:[%s5499_s0 + $0x20] sm:$0xff]  ;;  %s4286_s8 = smov 1   ;;  %s4287_s9 = smov 125   ;;  %vm207_vm0 = vcmask 515072  }
  0x14   :  { %3713 = vset.pattern.permute.xlu0 %v4284_v0  ;;  %3714 = vset.pattern.permute.xlu1 %v4284_v0  ;;  %v34_v7 = vld [vmem:[%s5499_s0 + $0x28] sm:$0xff]  ;;  %v35_v9 = vld [vmem:[%s5499_s0 + $0x30] sm:$0xff]  ;;  %v36_v10 = vld [vmem:[%s5499_s0 + $0x38] sm:$0xff]  ;;  %v62_v11 = vpack.c.bf16 %v32_v5, %v31_v3  ;;  %vm288_vm1 = vcmask 498688   ;;  %vm125_vm2 = vcmask 7168   ;;  %vm3316_vm4 = vcmask 506880  }
  0x15   :  { %v4344_v8 = vpack.c.bf16 %v34_v7, %v33_v6  ;;  %175 = vrot.lane.b32.xlu0 %v4333_v4, %s4285_s14  ;;  %v64_v12 = vpack.c.bf16 %v36_v10, %v35_v9  ;;  %v37_v13 = vld [vmem:[%s5499_s0 + $0x40] sm:$0xff]  ;;  %v38_v14 = vld [vmem:[%s5499_s0 + $0x48] sm:$0xff]  ;;  %v39_v15 = vld [vmem:[%s5499_s0 + $0x50] sm:$0xff] }
  0x16   :  { %v40_v16 = vld [vmem:[%s5499_s0 + $0x58] sm:$0xff]  ;;  %v65_v17 = vpack.c.bf16 %v38_v14, %v37_v13  ;;  %v41_v19 = vld [vmem:[%s5499_s0 + $0x60] sm:$0xff]  ;;  %v42_v20 = vld [vmem:[%s5499_s0 + $0x68] sm:$0xff] }
  0x17   :  { %179 = vrot.lane.b32.xlu1 %v4344_v8, %s4285_s14  ;;  %v66_v18 = vpack.c.bf16 %v40_v16, %v39_v15  ;;  %v43_v21 = vld [vmem:[%s5499_s0 + $0x70] sm:$0xff]  ;;  %v44_v22 = vld [vmem:[%s5499_s0 + $0x78] sm:$0xff]  ;;  %v45_v23 = vld [vmem:[%s5499_s0 + $0x80] sm:$0xff]  ;;  %v67_v25 = vpack.c.bf16 %v42_v20, %v41_v19 }
  0x18   :  { %v46_v24 = vld [vmem:[%s5499_s0 + $0x88] sm:$0xff]  ;;  %v47_v26 = vld [vmem:[%s5499_s0 + $0x90] sm:$0xff]  ;;  %v48_v27 = vld [vmem:[%s5499_s0 + $0x98] sm:$0xff]  ;;  %v68_v28 = vpack.c.bf16 %v44_v22, %v43_v21 }
  0x19   :  { %177 = vrot.lane.b32.xlu0 %v62_v11, %s4285_s14  ;;  %v49_v29 = vld [vmem:[%s5499_s0 + $0xa0] sm:$0xff]  ;;  %v50_v30 = vld [vmem:[%s5499_s0 + $0xa8] sm:$0xff]  ;;  %v69_v31 = vpack.c.bf16 %v46_v24, %v45_v23  ;;  %v51_v32 = vld [vmem:[%s5499_s0 + $0xb0] sm:$0xff]  ;;  %v70_v34 = vpack.c.bf16 %v48_v27, %v47_v26 }
  0x1a   :  { %v52_v33 = vld [vmem:[%s5499_s0 + $0xb8] sm:$0xff]  ;;  %v53_v35 = vld [vmem:[%s5499_s0 + $0xc0] sm:$0xff]  ;;  %v54_v36 = vld [vmem:[%s5499_s0 + $0xc8] sm:$0xff]  ;;  %v71_v37 = vpack.c.bf16 %v50_v30, %v49_v29 }
  0x1b   :  { %181 = vrot.lane.b32.xlu1 %v64_v12, %s4285_s14  ;;  %v55_v38 = vld [vmem:[%s5499_s0 + $0xd0] sm:$0xff]  ;;  %v56_v39 = vld [vmem:[%s5499_s0 + $0xd8] sm:$0xff]  ;;  %v72_v40 = vpack.c.bf16 %v52_v33, %v51_v32  ;;  %v57_v41 = vld [vmem:[%s5499_s0 + $0xe0] sm:$0xff]  ;;  %v73_v43 = vpack.c.bf16 %v54_v36, %v53_v35 }
  0x1c   :  { %v58_v42 = vld [vmem:[%s5499_s0 + $0xe8] sm:$0xff]  ;;  %v59_v44 = vld [vmem:[%s5499_s0 + $0xf0] sm:$0xff]  ;;  %v60_v45 = vld [vmem:[%s5499_s0 + $0xf8] sm:$0xff]  ;;  %v74_v46 = vpack.c.bf16 %v56_v39, %v55_v38 }
  0x1d   :  { %183 = vrot.lane.b32.xlu0 %v65_v17, %s4285_s14  ;;  %v75_v47 = vpack.c.bf16 %v58_v42, %v57_v41  ;;  %v76_v48 = vpack.c.bf16 %v60_v45, %v59_v44  ;;  %v3717_v49 = vld [vmem:[#allocation2 + $0xc] ss:$24 sps:$4 sm:$0xff]   ;;  %v3715_v30 = vld [vmem:[#allocation2 + $0x8] ss:$24 sps:$4 sm:$0xff]   ;;  %vm4528_vm3 = vmneg %vm125_vm2 }
  0x1e   :  { %v3720_v50 = vld [vmem:[#allocation2 + $0x30c] ss:$24 sps:$4 sm:$0xff]   ;;  %817 = vmatprep.mubr.bf16.mxu0 %v3717_v49  ;;  %v3721_v35 = vld [vmem:[#allocation2 + $0x3c] ss:$24 sps:$4 sm:$0xff]   ;;  %v3726_v41 = vld [vmem:[#allocation2 + $0x338] ss:$24 sps:$4 sm:$0xff]  }
  0x1f   :  { %185 = vrot.lane.b32.xlu1 %v66_v18, %s4285_s14  ;;  %945 = vmatprep.mubr.bf16.mxu1 %v3720_v50  ;;  %v3723_v36 = vld [vmem:[#allocation2 + $0x33c] ss:$24 sps:$4 sm:$0xff]   ;;  %v3727_v42 = vld [vmem:[#allocation2 + $0x6c] ss:$24 sps:$4 sm:$0xff]   ;;  %v3731_v49 = vld [vmem:[#allocation2 + $0x68] ss:$24 sps:$4 sm:$0xff]  }
  0x20   :  { %v3732_v50 = vld [vmem:[#allocation2 + $0x368] ss:$24 sps:$4 sm:$0xff]  }
  0x21   :  { %187 = vrot.lane.b32.xlu0 %v67_v25, %s4285_s14 }
  0x23   :  { %189 = vrot.lane.b32.xlu1 %v68_v28, %s4285_s14 }
  0x25   :  { %191 = vrot.lane.b32.xlu0 %v69_v31, %s4285_s14 }
  0x27   :  { %193 = vrot.lane.b32.xlu1 %v70_v34, %s4285_s14 }
  0x29   :  { %195 = vrot.lane.b32.xlu0 %v71_v37, %s4285_s14 }
  0x2b   :  { %197 = vrot.lane.b32.xlu1 %v72_v40, %s4285_s14 }
  0x2d   :  { %199 = vrot.lane.b32.xlu0 %v73_v43, %s4285_s14 }
  0x2f   :  { %201 = vrot.lane.b32.xlu1 %v74_v46, %s4285_s14 }
  0x31   :  { %203 = vrot.lane.b32.xlu0 %v75_v47, %s4285_s14 }
  0x33   :  { %205 = vrot.lane.b32.xlu1 %v76_v48, %s4285_s14 }
  0x35   :  { %93 = vrot.lane.b32.xlu0 %v4333_v4, %s4286_s8 }
  0x37   :  { %256 = vrot.lane.b32.xlu1 %v4333_v4, %s4287_s9 }
  0x39   :  { %95 = vrot.lane.b32.xlu0 %v62_v11, %s4286_s8 }
  0x3b   :  { %258 = vrot.lane.b32.xlu1 %v62_v11, %s4287_s9 }
  0x3d   :  { %97 = vrot.lane.b32.xlu0 %v4344_v8, %s4286_s8 }
  0x3f   :  { %260 = vrot.lane.b32.xlu1 %v4344_v8, %s4287_s9 }
  0x41   :  { %99 = vrot.lane.b32.xlu0 %v64_v12, %s4286_s8 }
  0x43   :  { %262 = vrot.lane.b32.xlu1 %v64_v12, %s4287_s9 }
  0x45   :  { %101 = vrot.lane.b32.xlu0 %v65_v17, %s4286_s8 }
  0x47   :  { %264 = vrot.lane.b32.xlu1 %v65_v17, %s4287_s9 }
  0x49   :  { %103 = vrot.lane.b32.xlu0 %v66_v18, %s4286_s8 }
  0x4b   :  { %266 = vrot.lane.b32.xlu1 %v66_v18, %s4287_s9 }
  0x4d   :  { %105 = vrot.lane.b32.xlu0 %v67_v25, %s4286_s8 }
  0x4f   :  { %268 = vrot.lane.b32.xlu1 %v67_v25, %s4287_s9 }
  0x51   :  { %107 = vrot.lane.b32.xlu0 %v68_v28, %s4286_s8 }
  0x53   :  { %270 = vrot.lane.b32.xlu1 %v68_v28, %s4287_s9 }
  0x55   :  { %109 = vrot.lane.b32.xlu0 %v69_v31, %s4286_s8 }
  0x57   :  { %272 = vrot.lane.b32.xlu1 %v69_v31, %s4287_s9  ;;  %v3718_v31 = vld [vmem:[#allocation2 + $0x308] ss:$24 sps:$4 sm:$0xff]  }
  0x59   :  { %111 = vrot.lane.b32.xlu0 %v70_v34, %s4286_s8 }
  0x5b   :  { %274 = vrot.lane.b32.xlu1 %v70_v34, %s4287_s9  ;;  %v3785_v34 = vld [vmem:[#allocation2 + $0x218] ss:$24 sps:$4 sm:$0xff]  }
  0x5d   :  { %113 = vrot.lane.b32.xlu0 %v71_v37, %s4286_s8 }
  0x5f   :  { %276 = vrot.lane.b32.xlu1 %v71_v37, %s4287_s9 }
  0x61   :  { %115 = vrot.lane.b32.xlu0 %v72_v40, %s4286_s8 }
  0x63   :  { %278 = vrot.lane.b32.xlu1 %v72_v40, %s4287_s9  ;;  %v3725_v40 = vld [vmem:[#allocation2 + $0x38] ss:$24 sps:$4 sm:$0xff]  }
  0x65   :  { %117 = vrot.lane.b32.xlu0 %v73_v43, %s4286_s8 }
  0x67   :  { %280 = vrot.lane.b32.xlu1 %v73_v43, %s4287_s9  ;;  %v3729_v43 = vld [vmem:[#allocation2 + $0x36c] ss:$24 sps:$4 sm:$0xff]  }
  0x69   :  { %119 = vrot.lane.b32.xlu0 %v74_v46, %s4286_s8 }
  0x6b   :  { %282 = vrot.lane.b32.xlu1 %v74_v46, %s4287_s9 }
  0x6d   :  { %121 = vrot.lane.b32.xlu0 %v75_v47, %s4286_s8 }
  0x6f   :  { %284 = vrot.lane.b32.xlu1 %v75_v47, %s4287_s9 }
  0x71   :  { %123 = vrot.lane.b32.xlu0 %v76_v48, %s4286_s8 }
  0x73   :  { %286 = vrot.lane.b32.xlu1 %v76_v48, %s4287_s9 }
  0x87   :  { %v176_v51 = vpop.permute.xlu0 %175 }
  0x88   :  { %v209_v52 = vsel %vm207_vm0, %v176_v51, 0  ;;  %v3733_v51 = vld [vmem:[#allocation2 + $0x9c] ss:$24 sps:$4 sm:$0xff]  }
  0x89   :  { %v180_v53 = vpop.permute.xlu1 %179  ;;  %786 = vmatpush1.bf16.msra.mxu0 %v209_v52  ;;  %3690 = vmatpush1.bf16.msra.mxu1 %v209_v52  ;;  %v3735_v52 = vld [vmem:[#allocation2 + $0x39c] ss:$24 sps:$4 sm:$0xff]  }
  0x8a   :  { %787 = vmatprep.subr.bf16.mxu0 %v4284_v0  ;;  %3675 = vmatprep.subr.bf16.mxu1 %v4284_v0  ;;  %v215_v57 = vsel %vm207_vm0, %v180_v53, 0 }
  0x8b   :  { %v178_v54 = vpop.permute.xlu0 %177 }
  0x8c   :  { %v212_v55 = vsel %vm207_vm0, %v178_v54, 0 }
  0x8d   :  { %v182_v56 = vpop.permute.xlu1 %181  ;;  %788 = vmatpush1.bf16.msra.mxu0 %v212_v55  ;;  %3691 = vmatpush1.bf16.msra.mxu1 %v212_v55 }
  0x8e   :  { %789 = vmatprep.subr.bf16.mxu0 %v4284_v0  ;;  %3676 = vmatprep.subr.bf16.mxu1 %v4284_v0  ;;  %v218_v60 = vsel %vm207_vm0, %v182_v56, 0 }
  0x8f   :  { %v184_v59 = vpop.permute.xlu0 %183 }
  0x90   :  { %v221_v63 = vsel %vm207_vm0, %v184_v59, 0 }
  0x91   :  { %v186_v58 = vpop.permute.xlu1 %185  ;;  %790 = vmatpush1.bf16.msra.mxu0 %v215_v57  ;;  %3692 = vmatpush1.bf16.msra.mxu1 %v215_v57  ;;  %v3737_v57 = vld [vmem:[#allocation2 + $0x98] ss:$24 sps:$4 sm:$0xff]  }
  0x92   :  { %791 = vmatprep.subr.bf16.mxu0 %v4284_v0  ;;  %3677 = vmatprep.subr.bf16.mxu1 %v4284_v0  ;;  %v224_v3 = vsel %vm207_vm0, %v186_v58, 0  ;;  %v3738_v58 = vld [vmem:[#allocation2 + $0x398] ss:$24 sps:$4 sm:$0xff]  }
  0x93   :  { %v188_v62 = vpop.permute.xlu0 %187 }
  0x94   :  { %v227_v6 = vsel %vm207_vm0, %v188_v62, 0 }
  0x95   :  { %v190_v61 = vpop.permute.xlu1 %189  ;;  %792 = vmatpush1.bf16.msra.mxu0 %v218_v60  ;;  %3693 = vmatpush1.bf16.msra.mxu1 %v218_v60  ;;  %v3739_v60 = vld [vmem:[#allocation2 + $0xcc] ss:$24 sps:$4 sm:$0xff]  }
  0x96   :  { %793 = vmatprep.subr.bf16.mxu0 %v4284_v0  ;;  %3678 = vmatprep.subr.bf16.mxu1 %v4284_v0  ;;  %v230_v9 = vsel %vm207_vm0, %v190_v61, 0  ;;  %v3741_v61 = vld [vmem:[#allocation2 + $0x3cc] ss:$24 sps:$4 sm:$0xff]  }
  0x97   :  { %v192_v2 = vpop.permute.xlu0 %191 }
  0x98   :  { %v233_v12 = vsel %vm207_vm0, %v192_v2, 0 }
  0x99   :  { %v194_v1 = vpop.permute.xlu1 %193  ;;  %794 = vmatpush1.bf16.msra.mxu0 %v221_v63  ;;  %3694 = vmatpush1.bf16.msra.mxu1 %v221_v63 }
  0x9a   :  { %795 = vmatprep.subr.bf16.mxu0 %v4284_v0  ;;  %3679 = vmatprep.subr.bf16.mxu1 %v4284_v0  ;;  %v236_v15 = vsel %vm207_vm0, %v194_v1, 0 }
  0x9b   :  { %v196_v5 = vpop.permute.xlu0 %195 }
  0x9c   :  { %v239_v17 = vsel %vm207_vm0, %v196_v5, 0  ;;  %v3745_v5 = vld [vmem:[#allocation2 + $0xfc] ss:$24 sps:$4 sm:$0xff]  }
  0x9d   :  { %v198_v4 = vpop.permute.xlu1 %197  ;;  %796 = vmatpush1.bf16.msra.mxu0 %v224_v3  ;;  %3695 = vmatpush1.bf16.msra.mxu1 %v224_v3  ;;  %v3743_v3 = vld [vmem:[#allocation2 + $0xc8] ss:$24 sps:$4 sm:$0xff]  }
  0x9e   :  { %797 = vmatprep.subr.bf16.mxu0 %v4284_v0  ;;  %3680 = vmatprep.subr.bf16.mxu1 %v4284_v0  ;;  %v242_v19 = vsel %vm207_vm0, %v198_v4, 0  ;;  %v3744_v4 = vld [vmem:[#allocation2 + $0x3c8] ss:$24 sps:$4 sm:$0xff]  }
  0x9f   :  { %v200_v8 = vpop.permute.xlu0 %199 }
  0xa0   :  { %v245_v22 = vsel %vm207_vm0, %v200_v8, 0 }
  0xa1   :  { %v202_v7 = vpop.permute.xlu1 %201  ;;  %798 = vmatpush1.bf16.msra.mxu0 %v227_v6  ;;  %3696 = vmatpush1.bf16.msra.mxu1 %v227_v6  ;;  %v3747_v6 = vld [vmem:[#allocation2 + $0x3fc] ss:$24 sps:$4 sm:$0xff]  }
  0xa2   :  { %799 = vmatprep.subr.bf16.mxu0 %v4284_v0  ;;  %3681 = vmatprep.subr.bf16.mxu1 %v4284_v0  ;;  %v248_v24 = vsel %vm207_vm0, %v202_v7, 0 }
  0xa3   :  { %v204_v11 = vpop.permute.xlu0 %203 }
  0xa4   :  { %v251_v26 = vsel %vm207_vm0, %v204_v11, 0 }
  0xa5   :  { %v206_v10 = vpop.permute.xlu1 %205  ;;  %800 = vmatpush1.bf16.msra.mxu0 %v230_v9  ;;  %3697 = vmatpush1.bf16.msra.mxu1 %v230_v9 }
  0xa6   :  { %801 = vmatprep.subr.bf16.mxu0 %v4284_v0  ;;  %3682 = vmatprep.subr.bf16.mxu1 %v4284_v0  ;;  %v254_v29 = vsel %vm207_vm0, %v206_v10, 0 }
  0xa7   :  { %v94_v14 = vpop.permute.xlu0 %93 }
  0xa9   :  { %v257_v13 = vpop.permute.xlu1 %256  ;;  %802 = vmatpush1.bf16.msra.mxu0 %v233_v12  ;;  %3698 = vmatpush1.bf16.msra.mxu1 %v233_v12  ;;  %v3749_v12 = vld [vmem:[#allocation2 + $0xf8] ss:$24 sps:$4 sm:$0xff]  }
  0xaa   :  { %803 = vmatprep.subr.bf16.mxu0 %v4284_v0  ;;  %3683 = vmatprep.subr.bf16.mxu1 %v4284_v0  ;;  %v290_v33 = vsel %vm288_vm1, %v257_v13, 0  ;;  %v3750_v13 = vld [vmem:[#allocation2 + $0x3f8] ss:$24 sps:$4 sm:$0xff]  }
  0xab   :  { %v96_v18 = vpop.permute.xlu0 %95 }
  0xad   :  { %v259_v16 = vpop.permute.xlu1 %258  ;;  %804 = vmatpush1.bf16.msra.mxu0 %v236_v15  ;;  %3699 = vmatpush1.bf16.msra.mxu1 %v236_v15  ;;  %v3753_v15 = vld [vmem:[#allocation2 + $0x42c] ss:$24 sps:$4 sm:$0xff]  }
  0xae   :  { %805 = vmatprep.subr.bf16.mxu0 %v4284_v0  ;;  %3684 = vmatprep.subr.bf16.mxu1 %v4284_v0  ;;  %v293_v38 = vsel %vm288_vm1, %v259_v16, 0 }
  0xaf   :  { %v98_v21 = vpop.permute.xlu0 %97 }
  0xb1   :  { %806 = vmatpush1.bf16.msra.mxu0 %v239_v17  ;;  %3700 = vmatpush1.bf16.msra.mxu1 %v239_v17  ;;  %v261_v20 = vpop.permute.xlu1 %260 }
  0xb2   :  { %807 = vmatprep.subr.bf16.mxu0 %v4284_v0  ;;  %3685 = vmatprep.subr.bf16.mxu1 %v4284_v0  ;;  %v296_v45 = vsel %vm288_vm1, %v261_v20, 0  ;;  %v3755_v20 = vld [vmem:[#allocation2 + $0x128] ss:$24 sps:$4 sm:$0xff]  }
  0xb3   :  { %v100_v25 = vpop.permute.xlu0 %99 }
  0xb5   :  { %808 = vmatpush1.bf16.msra.mxu0 %v242_v19  ;;  %3701 = vmatpush1.bf16.msra.mxu1 %v242_v19  ;;  %v263_v23 = vpop.permute.xlu1 %262 }
  0xb6   :  { %809 = vmatprep.subr.bf16.mxu0 %v4284_v0  ;;  %3686 = vmatprep.subr.bf16.mxu1 %v4284_v0  ;;  %v299_v47 = vsel %vm288_vm1, %v263_v23, 0  ;;  %v3757_v23 = vld [vmem:[#allocation2 + $0x15c] ss:$24 sps:$4 sm:$0xff]  }
  0xb7   :  { %v4521_v28 = vpop.permute.xlu0 %101 }
  0xb9   :  { %810 = vmatpush1.bf16.msra.mxu0 %v245_v22  ;;  %3702 = vmatpush1.bf16.msra.mxu1 %v245_v22  ;;  %v265_v27 = vpop.permute.xlu1 %264 }
  0xba   :  { %811 = vmatprep.subr.bf16.mxu0 %v4284_v0  ;;  %3687 = vmatprep.subr.bf16.mxu1 %v4284_v0  ;;  %v302_v54 = vsel %vm288_vm1, %v265_v27, 0 }
  0xbb   :  { %v104_v37 = vpop.permute.xlu0 %103 }
  0xbd   :  { %812 = vmatpush1.bf16.msra.mxu0 %v248_v24  ;;  %3703 = vmatpush1.bf16.msra.mxu1 %v248_v24  ;;  %v267_v32 = vpop.permute.xlu1 %266  ;;  %v3759_v24 = vld [vmem:[#allocation2 + $0x45c] ss:$24 sps:$4 sm:$0xff]  }
  0xbe   :  { %813 = vmatprep.subr.bf16.mxu0 %v4284_v0  ;;  %3688 = vmatprep.subr.bf16.mxu1 %v4284_v0  ;;  %v305_v56 = vsel %vm288_vm1, %v267_v32, 0  ;;  %v3765_v32 = vld [vmem:[#allocation2 + $0x48c] ss:$24 sps:$4 sm:$0xff]  }
  0xbf   :  { %v106_v44 = vpop.permute.xlu0 %105 }
  0xc1   :  { %814 = vmatpush1.bf16.msra.mxu0 %v251_v26  ;;  %3704 = vmatpush1.bf16.msra.mxu1 %v251_v26  ;;  %v269_v39 = vpop.permute.xlu1 %268 }
  0xc2   :  { %815 = vmatprep.subr.bf16.mxu0 %v4284_v0  ;;  %3689 = vmatprep.subr.bf16.mxu1 %v4284_v0  ;;  %v308_v62 = vsel %vm288_vm1, %v269_v39, 0  ;;  %v3767_v39 = vld [vmem:[#allocation2 + $0x188] ss:$24 sps:$4 sm:$0xff]  }
  0xc3   :  { %v108_v48 = vpop.permute.xlu0 %107 }
  0xc5   :  { %816 = vmatpush1.bf16.msra.mxu0 %v254_v29  ;;  %3705 = vmatpush1.bf16.msra.mxu1 %v254_v29  ;;  %v271_v46 = vpop.permute.xlu1 %270  ;;  %v3761_v29 = vld [vmem:[#allocation2 + $0x158] ss:$24 sps:$4 sm:$0xff]  }
  0xc6   :  { %1394 = vmatprep.subr.bf16.mxu1 %v4284_v0  ;;  %2067 = vmatprep.subr.bf16.mxu0 %v4284_v0  ;;  %v311_v2 = vsel %vm288_vm1, %v271_v46, 0  ;;  %v3777_v46 = vld [vmem:[#allocation2 + $0x4ec] ss:$24 sps:$4 sm:$0xff]  }
  0xc7   :  { %v110_v55 = vpop.permute.xlu0 %109 }
  0xc8   :  { %818 = vmatmul.mubr.bf16.vlgmr.msra.gmra.mrb[0].mxu0 %v3715_v30  ;;  %946 = vmatmul.mubr.bf16.vlgmr.msra.gmra.mrb[0].mxu1 %v3718_v31  ;;  %v3762_v30 = vld [vmem:[#allocation2 + $0x458] ss:$24 sps:$4 sm:$0xff]   ;;  %v3763_v31 = vld [vmem:[#allocation2 + $0x18c] ss:$24 sps:$4 sm:$0xff]  }
  0xc9   :  { %3515 = vmatpush1.bf16.msk.msra.mxu1 %vm4528_vm3, %v94_v14  ;;  %2068 = vmatpush1.bf16.msra.mxu0 %v290_v33  ;;  %v273_v53 = vpop.permute.xlu1 %272  ;;  %v3751_v14 = vld [vmem:[#allocation2 + $0x12c] ss:$24 sps:$4 sm:$0xff]  }
  0xca   :  { %825 = vmatprep.mubr.bf16.mxu0 %v3721_v35  ;;  %953 = vmatprep.mubr.bf16.mxu1 %v3723_v36  ;;  %v314_v8 = vsel %vm288_vm1, %v273_v53, 0  ;;  %v2420_v53 = vld [vmem:[%s5501_s2] sm:$0xff] }
  0xcb   :  { %1396 = vmatprep.subr.bf16.mxu1 %v4284_v0  ;;  %2069 = vmatprep.subr.bf16.mxu0 %v4284_v0  ;;  %v112_v63 = vpop.permute.xlu0 %111 }
  0xcc   :  { %2486 = vperm.xlu0 %3713, %v2420_v53   ;;  %v2452_v53 = vld [vmem:[%s5501_s2 + $0x100] sm:$0xff] }
  0xcd   :  { %3517 = vmatpush1.bf16.msk.msra.mxu1 %vm4528_vm3, %v96_v18  ;;  %2070 = vmatpush1.bf16.msra.mxu0 %v293_v38  ;;  %v275_v59 = vpop.permute.xlu1 %274 }
  0xce   :  { %1398 = vmatprep.subr.bf16.mxu1 %v4284_v0  ;;  %2071 = vmatprep.subr.bf16.mxu0 %v4284_v0  ;;  %v317_v10 = vsel %vm288_vm1, %v275_v59, 0  ;;  %v2422_v59 = vld [vmem:[%s5501_s2 + $0x10] sm:$0xff] }
  0xcf   :  { %v114_v7 = vpop.permute.xlu0 %113 }
  0xd0   :  { %826 = vmatmul.mubr.bf16.gmra.mrb[4].mxu0 %v3725_v40  ;;  %954 = vmatmul.mubr.bf16.gmra.mrb[4].mxu1 %v3726_v41  ;;  %v3768_v40 = vld [vmem:[#allocation2 + $0x488] ss:$24 sps:$4 sm:$0xff]   ;;  %v3769_v41 = vld [vmem:[#allocation2 + $0x1bc] ss:$24 sps:$4 sm:$0xff]  }
  0xd1   :  { %833 = vmatprep.mubr.bf16.mxu0 %v3727_v42  ;;  %961 = vmatprep.mubr.bf16.mxu1 %v3729_v43  ;;  %v277_v1 = vpop.permute.xlu1 %276  ;;  %v3771_v42 = vld [vmem:[#allocation2 + $0x4bc] ss:$24 sps:$4 sm:$0xff]   ;;  %v3773_v43 = vld [vmem:[#allocation2 + $0x1b8] ss:$24 sps:$4 sm:$0xff]  }
  0xd2   :  { %3519 = vmatpush1.bf16.msk.msra.mxu1 %vm4528_vm3, %v98_v21  ;;  %2072 = vmatpush1.bf16.msra.mxu0 %v296_v45  ;;  %v320_v17 = vsel %vm288_vm1, %v277_v1, 0  ;;  %v3756_v21 = vld [vmem:[#allocation2 + $0x428] ss:$24 sps:$4 sm:$0xff]   ;;  %v3775_v45 = vld [vmem:[#allocation2 + $0x1ec] ss:$24 sps:$4 sm:$0xff]  }
  0xd3   :  { %1400 = vmatprep.subr.bf16.mxu1 %v4284_v0  ;;  %2073 = vmatprep.subr.bf16.mxu0 %v4284_v0  ;;  %v116_v11 = vpop.permute.xlu0 %115  ;;  %v3798_v1 = vld [vmem:[#allocation2 + $0x578] ss:$24 sps:$4 sm:$0xff]  }
  0xd5   :  { %v279_v9 = vpop.permute.xlu1 %278 }
  0xd6   :  { %3521 = vmatpush1.bf16.msk.msra.mxu1 %vm4528_vm3, %v100_v25  ;;  %2074 = vmatpush1.bf16.msra.mxu0 %v299_v47  ;;  %v323_v19 = vsel %vm288_vm1, %v279_v9, 0  ;;  %v3780_v47 = vld [vmem:[#allocation2 + $0x4e8] ss:$24 sps:$4 sm:$0xff]  }
  0xd7   :  { %1402 = vmatprep.subr.bf16.mxu1 %v4284_v0  ;;  %2075 = vmatprep.subr.bf16.mxu0 %v4284_v0  ;;  %v118_v18 = vpop.permute.xlu0 %117  ;;  %v3804_v9 = vld [vmem:[#allocation2 + $0x5a8] ss:$24 sps:$4 sm:$0xff]  }
  0xd8   :  { %834 = vmatmul.mubr.bf16.gmra.mrb[8].mxu0 %v3731_v49  ;;  %962 = vmatmul.mubr.bf16.gmra.mrb[8].mxu1 %v3732_v50  ;;  %v3783_v49 = vld [vmem:[#allocation2 + $0x51c] ss:$24 sps:$4 sm:$0xff]   ;;  %v3786_v50 = vld [vmem:[#allocation2 + $0x518] ss:$24 sps:$4 sm:$0xff]  }
  0xd9   :  { %841 = vmatprep.mubr.bf16.mxu0 %v3733_v51  ;;  %969 = vmatprep.mubr.bf16.mxu1 %v3735_v52  ;;  %v281_v16 = vpop.permute.xlu1 %280  ;;  %v3787_v51 = vld [vmem:[#allocation2 + $0x24c] ss:$24 sps:$4 sm:$0xff]  }
  0xda   :  { %3523 = vmatpush1.bf16.msk.msra.mxu1 %vm4528_vm3, %v4521_v28  ;;  %2076 = vmatpush1.bf16.msra.mxu0 %v302_v54  ;;  %v326_v25 = vsel %vm288_vm1, %v281_v16, 0  ;;  %v3789_v52 = vld [vmem:[#allocation2 + $0x54c] ss:$24 sps:$4 sm:$0xff]   ;;  %v3809_v16 = vld [vmem:[#allocation2 + $0x2d8] ss:$24 sps:$4 sm:$0xff]  }
  0xdb   :  { %1404 = vmatprep.subr.bf16.mxu1 %v4284_v0  ;;  %2077 = vmatprep.subr.bf16.mxu0 %v4284_v0  ;;  %v120_v26 = vpop.permute.xlu0 %119  ;;  %v2421_v54 = vld [vmem:[%s5501_s2 + $0x8] sm:$0xff] }
  0xdc   :  { %2491 = vperm.xlu1 %3714, %v2421_v54   ;;  %v2453_v54 = vld [vmem:[%s5501_s2 + $0x108] sm:$0xff] }
  0xdd   :  { %v283_v22 = vpop.permute.xlu1 %282 }
  0xde   :  { %3525 = vmatpush1.bf16.msk.msra.mxu1 %vm4528_vm3, %v104_v37  ;;  %2078 = vmatpush1.bf16.msra.mxu0 %v305_v56  ;;  %v329_v28 = vsel %vm288_vm1, %v283_v22, 0  ;;  %v3792_v56 = vld [vmem:[#allocation2 + $0x548] ss:$24 sps:$4 sm:$0xff]  }
  0xdf   :  { %1406 = vmatprep.subr.bf16.mxu1 %v4284_v0  ;;  %2079 = vmatprep.subr.bf16.mxu0 %v4284_v0  ;;  %v122_v33 = vpop.permute.xlu0 %121  ;;  %v2436_v22 = vld [vmem:[%s5501_s2 + $0x80] sm:$0xff] }
  0xe0   :  { %842 = vmatmul.mubr.bf16.gmra.mrb[12].mxu0 %v3737_v57  ;;  %970 = vmatmul.mubr.bf16.gmra.mrb[12].mxu1 %v3738_v58  ;;  %v3793_v57 = vld [vmem:[#allocation2 + $0x27c] ss:$24 sps:$4 sm:$0xff]  }
  0xe1   :  { %849 = vmatprep.mubr.bf16.mxu0 %v3739_v60  ;;  %977 = vmatprep.mubr.bf16.mxu1 %v3741_v61  ;;  %v285_v27 = vpop.permute.xlu1 %284  ;;  %v3795_v58 = vld [vmem:[#allocation2 + $0x57c] ss:$24 sps:$4 sm:$0xff]   ;;  %v2424_v61 = vld [vmem:[%s5501_s2 + $0x20] sm:$0xff] }
  0xe2   :  { %3527 = vmatpush1.bf16.msk.msra.mxu1 %vm4528_vm3, %v106_v44  ;;  %2080 = vmatpush1.bf16.msra.mxu0 %v308_v62  ;;  %v332_v35 = vsel %vm288_vm1, %v285_v27, 0  ;;  %v3774_v44 = vld [vmem:[#allocation2 + $0x4b8] ss:$24 sps:$4 sm:$0xff]   ;;  %v2425_v62 = vld [vmem:[%s5501_s2 + $0x28] sm:$0xff]  ;;  %v3819_v27 = vld [vmem:[#allocation2 + $0x44] ss:$24 sps:$4 sm:$0xff]  }
  0xe3   :  { %1408 = vmatprep.subr.bf16.mxu1 %v4284_v0  ;;  %2081 = vmatprep.subr.bf16.mxu0 %v4284_v0  ;;  %v124_v37 = vpop.permute.xlu0 %123  ;;  %v2423_v60 = vld [vmem:[%s5501_s2 + $0x18] sm:$0xff] }
  0xe4   :  { %2496 = vperm.xlu1 %3714, %v2422_v59   ;;  %2501 = vperm.xlu0 %3713, %v2423_v60   ;;  %v2454_v59 = vld [vmem:[%s5501_s2 + $0x110] sm:$0xff]  ;;  %v2455_v60 = vld [vmem:[%s5501_s2 + $0x118] sm:$0xff] }
  0xe5   :  { %v287_v36 = vpop.permute.xlu1 %286 }
  0xe6   :  { %3529 = vmatpush1.bf16.msk.msra.mxu1 %vm4528_vm3, %v108_v48  ;;  %2082 = vmatpush1.bf16.msra.mxu0 %v311_v2  ;;  %v335_v38 = vsel %vm288_vm1, %v287_v36, 0  ;;  %v3781_v48 = vld [vmem:[#allocation2 + $0x21c] ss:$24 sps:$4 sm:$0xff]   ;;  %v3799_v2 = vld [vmem:[#allocation2 + $0x2ac] ss:$24 sps:$4 sm:$0xff]  }
  0xe7   :  { %1410 = vmatprep.subr.bf16.mxu1 %v4284_v0  ;;  %2083 = vmatprep.subr.bf16.mxu0 %v4284_v0  ;;  %v3825_v36 = vld [vmem:[#allocation2 + $0x74] ss:$24 sps:$4 sm:$0xff]  }
  0xe8   :  { %850 = vmatmul.mubr.bf16.gmra.mrb[16].mxu0 %v3743_v3  ;;  %978 = vmatmul.mubr.bf16.gmra.mrb[16].mxu1 %v3744_v4  ;;  %v3801_v3 = vld [vmem:[#allocation2 + $0x5ac] ss:$24 sps:$4 sm:$0xff]   ;;  %v2426_v4 = vld [vmem:[%s5501_s2 + $0x30] sm:$0xff] }
  0xe9   :  { %857 = vmatprep.mubr.bf16.mxu0 %v3745_v5  ;;  %985 = vmatprep.mubr.bf16.mxu1 %v3747_v6  ;;  %v2427_v5 = vld [vmem:[%s5501_s2 + $0x38] sm:$0xff]  ;;  %v2428_v6 = vld [vmem:[%s5501_s2 + $0x40] sm:$0xff] }
  0xea   :  { %3531 = vmatpush1.bf16.msk.msra.mxu1 %vm4528_vm3, %v110_v55  ;;  %2084 = vmatpush1.bf16.msra.mxu0 %v314_v8  ;;  %v3791_v55 = vld [vmem:[#allocation2 + $0x248] ss:$24 sps:$4 sm:$0xff]  }
  0xeb   :  { %1412 = vmatprep.subr.bf16.mxu1 %v4284_v0  ;;  %2085 = vmatprep.subr.bf16.mxu0 %v4284_v0  ;;  %v3803_v8 = vld [vmem:[#allocation2 + $0x2a8] ss:$24 sps:$4 sm:$0xff]  }
  0xec   :  { %2506 = vperm.xlu1 %3714, %v2424_v61   ;;  %2511 = vperm.xlu0 %3713, %v2425_v62   ;;  %v2456_v61 = vld [vmem:[%s5501_s2 + $0x120] sm:$0xff]  ;;  %v2457_v62 = vld [vmem:[%s5501_s2 + $0x128] sm:$0xff] }
  0xee   :  { %3533 = vmatpush1.bf16.msk.msra.mxu1 %vm4528_vm3, %v112_v63  ;;  %2086 = vmatpush1.bf16.msra.mxu0 %v317_v10  ;;  %v3797_v63 = vld [vmem:[#allocation2 + $0x278] ss:$24 sps:$4 sm:$0xff]   ;;  %v3805_v10 = vld [vmem:[#allocation2 + $0x2dc] ss:$24 sps:$4 sm:$0xff]  }
  0xef   :  { %1414 = vmatprep.subr.bf16.mxu1 %v4284_v0  ;;  %2087 = vmatprep.subr.bf16.mxu0 %v4284_v0 }
  0xf0   :  { %858 = vmatmul.mubr.bf16.gmra.mrb[20].mxu0 %v3749_v12  ;;  %986 = vmatmul.mubr.bf16.gmra.mrb[20].mxu1 %v3750_v13  ;;  %v2430_v12 = vld [vmem:[%s5501_s2 + $0x50] sm:$0xff]  ;;  %v2431_v13 = vld [vmem:[%s5501_s2 + $0x58] sm:$0xff] }
  0xf1   :  { %865 = vmatprep.mubr.bf16.mxu0 %v3751_v14  ;;  %993 = vmatprep.mubr.bf16.mxu1 %v3753_v15  ;;  %v2432_v14 = vld [vmem:[%s5501_s2 + $0x60] sm:$0xff]  ;;  %v2433_v15 = vld [vmem:[%s5501_s2 + $0x68] sm:$0xff] }
  0xf2   :  { %3535 = vmatpush1.bf16.msk.msra.mxu1 %vm4528_vm3, %v114_v7  ;;  %2088 = vmatpush1.bf16.msra.mxu0 %v320_v17  ;;  %v2429_v7 = vld [vmem:[%s5501_s2 + $0x48] sm:$0xff]  ;;  %v3810_v17 = vld [vmem:[#allocation2 + $0x5d8] ss:$24 sps:$4 sm:$0xff]  }
  0xf3   :  { %1416 = vmatprep.subr.bf16.mxu1 %v4284_v0  ;;  %2089 = vmatprep.subr.bf16.mxu0 %v4284_v0 }
  0xf4   :  { %2516 = vperm.xlu1 %3714, %v2426_v4   ;;  %2521 = vperm.xlu0 %3713, %v2427_v5   ;;  %v2458_v4 = vld [vmem:[%s5501_s2 + $0x130] sm:$0xff]  ;;  %v2459_v5 = vld [vmem:[%s5501_s2 + $0x138] sm:$0xff] }
  0xf6   :  { %3537 = vmatpush1.bf16.msk.msra.mxu1 %vm4528_vm3, %v116_v11  ;;  %2090 = vmatpush1.bf16.msra.mxu0 %v323_v19  ;;  %v3807_v11 = vld [vmem:[#allocation2 + $0x5dc] ss:$24 sps:$4 sm:$0xff]  }
  0xf7   :  { %1418 = vmatprep.subr.bf16.mxu1 %v4284_v0  ;;  %2091 = vmatprep.subr.bf16.mxu0 %v4284_v0  ;;  %v3816_v19 = vld [vmem:[#allocation2 + $0x14] ss:$24 sps:$4 sm:$0xff]  }
  0xf8   :  { %866 = vmatmul.mubr.bf16.gmra.mrb[24].mxu0 %v3755_v20  ;;  %994 = vmatmul.mubr.bf16.gmra.mrb[24].mxu1 %v3756_v21  ;;  %v2434_v20 = vld [vmem:[%s5501_s2 + $0x70] sm:$0xff]  ;;  %v2435_v21 = vld [vmem:[%s5501_s2 + $0x78] sm:$0xff] }
  0xf9   :  { %873 = vmatprep.mubr.bf16.mxu0 %v3757_v23  ;;  %1001 = vmatprep.mubr.bf16.mxu1 %v3759_v24  ;;  %v2437_v23 = vld [vmem:[%s5501_s2 + $0x88] sm:$0xff]  ;;  %v3811_v24 = vld [vmem:[#allocation2] ss:$24 sps:$4 sm:$0xff]  }
  0xfa   :  { %3539 = vmatpush1.bf16.msk.msra.mxu1 %vm4528_vm3, %v118_v18  ;;  %2092 = vmatpush1.bf16.msra.mxu0 %v326_v25  ;;  %v3813_v18 = vld [vmem:[#allocation2 + $0x4] ss:$24 sps:$4 sm:$0xff]   ;;  %v3814_v25 = vld [vmem:[#allocation2 + $0x10] ss:$24 sps:$4 sm:$0xff]  }
  0xfb   :  { %1420 = vmatprep.subr.bf16.mxu1 %v4284_v0  ;;  %2093 = vmatprep.subr.bf16.mxu0 %v4284_v0 }
  0xfc   :  { %2526 = vperm.xlu1 %3714, %v2428_v6   ;;  %2531 = vperm.xlu0 %3713, %v2429_v7   ;;  %v2460_v6 = vld [vmem:[%s5501_s2 + $0x140] sm:$0xff]  ;;  %v2461_v7 = vld [vmem:[%s5501_s2 + $0x148] sm:$0xff] }
  0xfe   :  { %3541 = vmatpush1.bf16.msk.msra.mxu1 %vm4528_vm3, %v120_v26  ;;  %2094 = vmatpush1.bf16.msra.mxu0 %v329_v28  ;;  %v3817_v26 = vld [vmem:[#allocation2 + $0x34] ss:$24 sps:$4 sm:$0xff]  }
  0xff   :  { %1422 = vmatprep.subr.bf16.mxu1 %v4284_v0  ;;  %2095 = vmatprep.subr.bf16.mxu0 %v4284_v0  ;;  %v2438_v28 = vld [vmem:[%s5501_s2 + $0x90] sm:$0xff] }
 0x100   :  { %874 = vmatmul.mubr.bf16.gmra.mrb[28].mxu0 %v3761_v29  ;;  %1002 = vmatmul.mubr.bf16.gmra.mrb[28].mxu1 %v3762_v30  ;;  %v2439_v29 = vld [vmem:[%s5501_s2 + $0x98] sm:$0xff]  ;;  %v2440_v30 = vld [vmem:[%s5501_s2 + $0xa0] sm:$0xff] }
 0x101   :  { %881 = vmatprep.mubr.bf16.mxu0 %v3763_v31  ;;  %1009 = vmatprep.mubr.bf16.mxu1 %v3765_v32  ;;  %v2441_v31 = vld [vmem:[%s5501_s2 + $0xa8] sm:$0xff] }
 0x102   :  { %3543 = vmatpush1.bf16.msk.msra.mxu1 %vm4528_vm3, %v122_v33  ;;  %2096 = vmatpush1.bf16.msra.mxu0 %v332_v35  ;;  %v3821_v32 = vld [vmem:[#allocation2 + $0x30] ss:$24 sps:$4 sm:$0xff]   ;;  %v3822_v33 = vld [vmem:[#allocation2 + $0x40] ss:$24 sps:$4 sm:$0xff]   ;;  %v3823_v35 = vld [vmem:[#allocation2 + $0x64] ss:$24 sps:$4 sm:$0xff]  }
 0x103   :  { %1424 = vmatprep.subr.bf16.mxu1 %v4284_v0  ;;  %2097 = vmatprep.subr.bf16.mxu0 %v4284_v0  ;;  %v3779_v0 = vld [vmem:[#allocation2 + $0x1e8] ss:$24 sps:$4 sm:$0xff]  }
 0x104   :  { %2536 = vperm.xlu1 %3714, %v2430_v12   ;;  %2541 = vperm.xlu0 %3713, %v2431_v13   ;;  %v2462_v12 = vld [vmem:[%s5501_s2 + $0x150] sm:$0xff]  ;;  %v2463_v13 = vld [vmem:[%s5501_s2 + $0x158] sm:$0xff] }
 0x106   :  { %3545 = vmatpush1.bf16.msk.msra.mxu1 %vm4528_vm3, %v124_v37  ;;  %2098 = vmatpush1.bf16.msra.mxu0 %v335_v38  ;;  %v2442_v37 = vld [vmem:[%s5501_s2 + $0xb0] sm:$0xff]  ;;  %v2443_v38 = vld [vmem:[%s5501_s2 + $0xb8] sm:$0xff] }
 0x108   :  { %882 = vmatmul.mubr.bf16.gmra.mrb[32].mxu0 %v3767_v39  ;;  %1010 = vmatmul.mubr.bf16.gmra.mrb[32].mxu1 %v3768_v40  ;;  %v2444_v39 = vld [vmem:[%s5501_s2 + $0xc0] sm:$0xff]  ;;  %v2445_v40 = vld [vmem:[%s5501_s2 + $0xc8] sm:$0xff] }
 0x109   :  { %889 = vmatprep.mubr.bf16.mxu0 %v3769_v41  ;;  %1017 = vmatprep.mubr.bf16.mxu1 %v3771_v42  ;;  %v3827_v41 = vld [vmem:[#allocation2 + $0x60] ss:$24 sps:$4 sm:$0xff]   ;;  %v3828_v42 = vld [vmem:[#allocation2 + $0x70] ss:$24 sps:$4 sm:$0xff]  }
 0x10a   :  { %2546 = vperm.xlu1 %3714, %v2432_v14   ;;  %2551 = vperm.xlu0 %3713, %v2433_v15   ;;  %v2464_v14 = vld [vmem:[%s5501_s2 + $0x160] sm:$0xff]  ;;  %v2465_v15 = vld [vmem:[%s5501_s2 + $0x168] sm:$0xff] }
 0x10e   :  { %2556 = vperm.xlu1 %3714, %v2434_v20   ;;  %2561 = vperm.xlu0 %3713, %v2435_v21   ;;  %v2466_v20 = vld [vmem:[%s5501_s2 + $0x170] sm:$0xff]  ;;  %v2467_v21 = vld [vmem:[%s5501_s2 + $0x178] sm:$0xff] }
 0x110   :  { %890 = vmatmul.mubr.bf16.gmra.mrb[36].mxu0 %v3773_v43  ;;  %1018 = vmatmul.mubr.bf16.gmra.mrb[36].mxu1 %v3774_v44  ;;  %v3829_v43 = vld [vmem:[#allocation2 + $0x94] ss:$24 sps:$4 sm:$0xff]   ;;  %v3831_v44 = vld [vmem:[#allocation2 + $0xa4] ss:$24 sps:$4 sm:$0xff]  }
 0x111   :  { %897 = vmatprep.mubr.bf16.mxu0 %v3775_v45  ;;  %1025 = vmatprep.mubr.bf16.mxu1 %v3777_v46  ;;  %v2446_v45 = vld [vmem:[%s5501_s2 + $0xd0] sm:$0xff]  ;;  %v2447_v46 = vld [vmem:[%s5501_s2 + $0xd8] sm:$0xff] }
 0x112   :  { %2566 = vperm.xlu1 %3714, %v2436_v22   ;;  %2571 = vperm.xlu0 %3713, %v2437_v23   ;;  %v2468_v22 = vld [vmem:[%s5501_s2 + $0x180] sm:$0xff]  ;;  %v2469_v23 = vld [vmem:[%s5501_s2 + $0x188] sm:$0xff] }
 0x116   :  { %2576 = vperm.xlu1 %3714, %v2438_v28   ;;  %2581 = vperm.xlu0 %3713, %v2439_v29   ;;  %v2470_v28 = vld [vmem:[%s5501_s2 + $0x190] sm:$0xff]  ;;  %v2471_v29 = vld [vmem:[%s5501_s2 + $0x198] sm:$0xff] }
 0x118   :  { %898 = vmatmul.mubr.bf16.gmra.mrb[40].mxu0 %v3779_v0  ;;  %1026 = vmatmul.mubr.bf16.gmra.mrb[40].mxu1 %v3780_v47  ;;  %v2448_v0 = vld [vmem:[%s5501_s2 + $0xe0] sm:$0xff]  ;;  %v2449_v47 = vld [vmem:[%s5501_s2 + $0xe8] sm:$0xff] }
 0x119   :  { %905 = vmatprep.mubr.bf16.mxu0 %v3781_v48  ;;  %1033 = vmatprep.mubr.bf16.mxu1 %v3783_v49  ;;  %v3833_v48 = vld [vmem:[#allocation2 + $0x90] ss:$24 sps:$4 sm:$0xff]   ;;  %v3834_v49 = vld [vmem:[#allocation2 + $0xa0] ss:$24 sps:$4 sm:$0xff]  }
 0x11a   :  { %2586 = vperm.xlu1 %3714, %v2440_v30   ;;  %2591 = vperm.xlu0 %3713, %v2441_v31   ;;  %v2472_v30 = vld [vmem:[%s5501_s2 + $0x1a0] sm:$0xff]  ;;  %v2473_v31 = vld [vmem:[%s5501_s2 + $0x1a8] sm:$0xff] }
 0x11e   :  { %2596 = vperm.xlu1 %3714, %v2442_v37   ;;  %2601 = vperm.xlu0 %3713, %v2443_v38   ;;  %v2474_v37 = vld [vmem:[%s5501_s2 + $0x1b0] sm:$0xff]  ;;  %v2475_v38 = vld [vmem:[%s5501_s2 + $0x1b8] sm:$0xff] }
 0x120   :  { %906 = vmatmul.mubr.bf16.gmra.mrb[44].mxu0 %v3785_v34  ;;  %1034 = vmatmul.mubr.bf16.gmra.mrb[44].mxu1 %v3786_v50  ;;  %v3835_v34 = vld [vmem:[#allocation2 + $0xc4] ss:$24 sps:$4 sm:$0xff]   ;;  %v3837_v50 = vld [vmem:[#allocation2 + $0xd4] ss:$24 sps:$4 sm:$0xff]  }
 0x121   :  { %913 = vmatprep.mubr.bf16.mxu0 %v3787_v51  ;;  %1041 = vmatprep.mubr.bf16.mxu1 %v3789_v52  ;;  %v2450_v51 = vld [vmem:[%s5501_s2 + $0xf0] sm:$0xff]  ;;  %v2451_v52 = vld [vmem:[%s5501_s2 + $0xf8] sm:$0xff] }
 0x122   :  { %2606 = vperm.xlu1 %3714, %v2444_v39   ;;  %2611 = vperm.xlu0 %3713, %v2445_v40   ;;  %v2476_v39 = vld [vmem:[%s5501_s2 + $0x1c0] sm:$0xff]  ;;  %v2477_v40 = vld [vmem:[%s5501_s2 + $0x1c8] sm:$0xff] }
 0x126   :  { %2616 = vperm.xlu1 %3714, %v2446_v45   ;;  %2621 = vperm.xlu0 %3713, %v2447_v46   ;;  %v2478_v45 = vld [vmem:[%s5501_s2 + $0x1d0] sm:$0xff]  ;;  %v2479_v46 = vld [vmem:[%s5501_s2 + $0x1d8] sm:$0xff] }
 0x128   :  { %914 = vmatmul.mubr.bf16.gmra.mrb[48].mxu0 %v3791_v55  ;;  %1042 = vmatmul.mubr.bf16.gmra.mrb[48].mxu1 %v3792_v56  ;;  %v3839_v55 = vld [vmem:[#allocation2 + $0xc0] ss:$24 sps:$4 sm:$0xff]   ;;  %v3840_v56 = vld [vmem:[#allocation2 + $0xd0] ss:$24 sps:$4 sm:$0xff]  }
 0x129   :  { %921 = vmatprep.mubr.bf16.mxu0 %v3793_v57  ;;  %1049 = vmatprep.mubr.bf16.mxu1 %v3795_v58  ;;  %v3841_v57 = vld [vmem:[#allocation2 + $0xf4] ss:$24 sps:$4 sm:$0xff]   ;;  %v3843_v58 = vld [vmem:[#allocation2 + $0x104] ss:$24 sps:$4 sm:$0xff]  }
 0x12a   :  { %2626 = vperm.xlu1 %3714, %v2448_v0   ;;  %2631 = vperm.xlu0 %3713, %v2449_v47   ;;  %v2480_v0 = vld [vmem:[%s5501_s2 + $0x1e0] sm:$0xff]  ;;  %v2481_v47 = vld [vmem:[%s5501_s2 + $0x1e8] sm:$0xff] }
 0x12e   :  { %2636 = vperm.xlu1 %3714, %v2450_v51   ;;  %2641 = vperm.xlu0 %3713, %v2451_v52   ;;  %v3882_v52 = vld [vmem:[#allocation2 + $0x220] ss:$24 sps:$4 sm:$0xff]  }
 0x130   :  { %922 = vmatmul.mubr.bf16.gmra.mrb[52].mxu0 %v3797_v63  ;;  %1050 = vmatmul.mubr.bf16.gmra.mrb[52].mxu1 %v3798_v1  ;;  %v3845_v63 = vld [vmem:[#allocation2 + $0xf0] ss:$24 sps:$4 sm:$0xff]   ;;  %v3846_v1 = vld [vmem:[#allocation2 + $0x100] ss:$24 sps:$4 sm:$0xff]  }
 0x131   :  { %929 = vmatprep.mubr.bf16.mxu0 %v3799_v2  ;;  %1057 = vmatprep.mubr.bf16.mxu1 %v3801_v3  ;;  %v3847_v2 = vld [vmem:[#allocation2 + $0x124] ss:$24 sps:$4 sm:$0xff]   ;;  %v3849_v3 = vld [vmem:[#allocation2 + $0x134] ss:$24 sps:$4 sm:$0xff]  }
 0x132   :  { %2646 = vperm.xlu1 %3714, %v2452_v53   ;;  %2651 = vperm.xlu0 %3713, %v2453_v54   ;;  %v3883_v53 = vld [vmem:[#allocation2 + $0x244] ss:$24 sps:$4 sm:$0xff]  }
 0x136   :  { %2656 = vperm.xlu1 %3714, %v2454_v59   ;;  %2661 = vperm.xlu0 %3713, %v2455_v60  }
 0x138   :  { %930 = vmatmul.mubr.bf16.gmra.mrb[56].mxu0 %v3803_v8  ;;  %1058 = vmatmul.mubr.bf16.gmra.mrb[56].mxu1 %v3804_v9  ;;  %v3851_v8 = vld [vmem:[#allocation2 + $0x120] ss:$24 sps:$4 sm:$0xff]   ;;  %v3852_v9 = vld [vmem:[#allocation2 + $0x130] ss:$24 sps:$4 sm:$0xff]  }
 0x139   :  { %937 = vmatprep.mubr.bf16.mxu0 %v3805_v10  ;;  %1065 = vmatprep.mubr.bf16.mxu1 %v3807_v11  ;;  %v3853_v10 = vld [vmem:[#allocation2 + $0x154] ss:$24 sps:$4 sm:$0xff]   ;;  %v3855_v11 = vld [vmem:[#allocation2 + $0x164] ss:$24 sps:$4 sm:$0xff]  }
 0x13a   :  { %2666 = vperm.xlu1 %3714, %v2456_v61   ;;  %2671 = vperm.xlu0 %3713, %v2457_v62  }
 0x13e   :  { %2676 = vperm.xlu1 %3714, %v2458_v4   ;;  %2681 = vperm.xlu0 %3713, %v2459_v5  }
 0x140   :  { %938 = vmatmul.mubr.bf16.gmra.mrb[60].mxu0 %v3809_v16  ;;  %1066 = vmatmul.mubr.bf16.gmra.mrb[60].mxu1 %v3810_v17  ;;  %v3857_v16 = vld [vmem:[#allocation2 + $0x150] ss:$24 sps:$4 sm:$0xff]   ;;  %v3858_v17 = vld [vmem:[#allocation2 + $0x160] ss:$24 sps:$4 sm:$0xff]  }
 0x141   :  { %1426 = vmatprep.mubr.bf16.mxu1 %v3813_v18  ;;  %2099 = vmatprep.mubr.bf16.mxu0 %v3816_v19  ;;  %v3859_v18 = vld [vmem:[#allocation2 + $0x184] ss:$24 sps:$4 sm:$0xff]   ;;  %v3861_v19 = vld [vmem:[#allocation2 + $0x194] ss:$24 sps:$4 sm:$0xff]  }
 0x142   :  { %2686 = vperm.xlu1 %3714, %v2460_v6   ;;  %2691 = vperm.xlu0 %3713, %v2461_v7   ;;  %v3889_v6 = vld [vmem:[#allocation2 + $0x274] ss:$24 sps:$4 sm:$0xff]   ;;  %v3891_v7 = vld [vmem:[#allocation2 + $0x284] ss:$24 sps:$4 sm:$0xff]  }
 0x146   :  { %2696 = vperm.xlu1 %3714, %v2462_v12   ;;  %2701 = vperm.xlu0 %3713, %v2463_v13  }
 0x148   :  { %1427 = vmatmul.mubr.bf16.vlgmr.msra.gmra.mrb[64].mxu1 %v3811_v24  ;;  %2100 = vmatmul.mubr.bf16.vlgmr.msra.gmra.mrb[64].mxu0 %v3814_v25  ;;  %v3863_v24 = vld [vmem:[#allocation2 + $0x180] ss:$24 sps:$4 sm:$0xff]   ;;  %v3864_v25 = vld [vmem:[#allocation2 + $0x190] ss:$24 sps:$4 sm:$0xff]  }
 0x149   :  { %1434 = vmatprep.mubr.bf16.mxu1 %v3817_v26  ;;  %2107 = vmatprep.mubr.bf16.mxu0 %v3819_v27  ;;  %v3865_v26 = vld [vmem:[#allocation2 + $0x1b4] ss:$24 sps:$4 sm:$0xff]   ;;  %v3867_v27 = vld [vmem:[#allocation2 + $0x1c4] ss:$24 sps:$4 sm:$0xff]  }
 0x14a   :  { %2706 = vperm.xlu1 %3714, %v2464_v14   ;;  %2711 = vperm.xlu0 %3713, %v2465_v15   ;;  %v3893_v14 = vld [vmem:[#allocation2 + $0x270] ss:$24 sps:$4 sm:$0xff]   ;;  %v3894_v15 = vld [vmem:[#allocation2 + $0x280] ss:$24 sps:$4 sm:$0xff]  }
 0x14e   :  { %2716 = vperm.xlu1 %3714, %v2466_v20   ;;  %2721 = vperm.xlu0 %3713, %v2467_v21  }
 0x150   :  { %1435 = vmatmul.mubr.bf16.gmra.mrb[68].mxu1 %v3821_v32  ;;  %2108 = vmatmul.mubr.bf16.gmra.mrb[68].mxu0 %v3822_v33  ;;  %v3869_v32 = vld [vmem:[#allocation2 + $0x1b0] ss:$24 sps:$4 sm:$0xff]   ;;  %v3870_v33 = vld [vmem:[#allocation2 + $0x1c0] ss:$24 sps:$4 sm:$0xff]  }
 0x151   :  { %1442 = vmatprep.mubr.bf16.mxu1 %v3823_v35  ;;  %2115 = vmatprep.mubr.bf16.mxu0 %v3825_v36  ;;  %v3871_v35 = vld [vmem:[#allocation2 + $0x1e4] ss:$24 sps:$4 sm:$0xff]   ;;  %v3873_v36 = vld [vmem:[#allocation2 + $0x1f4] ss:$24 sps:$4 sm:$0xff]  }
 0x152   :  { %2726 = vperm.xlu1 %3714, %v2468_v22   ;;  %2731 = vperm.xlu0 %3713, %v2469_v23  }
 0x156   :  { %2736 = vperm.xlu1 %3714, %v2470_v28   ;;  %2741 = vperm.xlu0 %3713, %v2471_v29  }
 0x158   :  { %1443 = vmatmul.mubr.bf16.gmra.mrb[72].mxu1 %v3827_v41  ;;  %2116 = vmatmul.mubr.bf16.gmra.mrb[72].mxu0 %v3828_v42  ;;  %v3875_v41 = vld [vmem:[#allocation2 + $0x1e0] ss:$24 sps:$4 sm:$0xff]   ;;  %v3876_v42 = vld [vmem:[#allocation2 + $0x1f0] ss:$24 sps:$4 sm:$0xff]  }
 0x159   :  { %1450 = vmatprep.mubr.bf16.mxu1 %v3829_v43  ;;  %2123 = vmatprep.mubr.bf16.mxu0 %v3831_v44  ;;  %v3877_v43 = vld [vmem:[#allocation2 + $0x214] ss:$24 sps:$4 sm:$0xff]   ;;  %v3879_v44 = vld [vmem:[#allocation2 + $0x224] ss:$24 sps:$4 sm:$0xff]  }
 0x15a   :  { %2746 = vperm.xlu1 %3714, %v2472_v30   ;;  %2751 = vperm.xlu0 %3713, %v2473_v31   ;;  %v3901_v30 = vld [vmem:[#allocation2 + $0x2d4] ss:$24 sps:$4 sm:$0xff]   ;;  %v3903_v31 = vld [vmem:[#allocation2 + $0x2e4] ss:$24 sps:$4 sm:$0xff]  }
 0x15e   :  { %2756 = vperm.xlu1 %3714, %v2474_v37   ;;  %2761 = vperm.xlu0 %3713, %v2475_v38  }
 0x160   :  { %1451 = vmatmul.mubr.bf16.gmra.mrb[76].mxu1 %v3833_v48  ;;  %2124 = vmatmul.mubr.bf16.gmra.mrb[76].mxu0 %v3834_v49 }
 0x161   :  { %1458 = vmatprep.mubr.bf16.mxu1 %v3835_v34  ;;  %2131 = vmatprep.mubr.bf16.mxu0 %v3837_v50  ;;  %v3881_v34 = vld [vmem:[#allocation2 + $0x210] ss:$24 sps:$4 sm:$0xff]  }
 0x162   :  { %2766 = vperm.xlu1 %3714, %v2476_v39   ;;  %2771 = vperm.xlu0 %3713, %v2477_v40   ;;  %v3905_v39 = vld [vmem:[#allocation2 + $0x2d0] ss:$24 sps:$4 sm:$0xff]   ;;  %v3906_v40 = vld [vmem:[#allocation2 + $0x2e0] ss:$24 sps:$4 sm:$0xff]  }
 0x166   :  { %2776 = vperm.xlu1 %3714, %v2478_v45   ;;  %2781 = vperm.xlu0 %3713, %v2479_v46  }
 0x168   :  { %1459 = vmatmul.mubr.bf16.gmra.mrb[80].mxu1 %v3839_v55  ;;  %2132 = vmatmul.mubr.bf16.gmra.mrb[80].mxu0 %v3840_v56  ;;  %v3885_v56 = vld [vmem:[#allocation2 + $0x254] ss:$24 sps:$4 sm:$0xff]  }
 0x169   :  { %1466 = vmatprep.mubr.bf16.mxu1 %v3841_v57  ;;  %2139 = vmatprep.mubr.bf16.mxu0 %v3843_v58  ;;  %v2482_v57 = vld [vmem:[%s5501_s2 + $0x1f0] sm:$0xff]  ;;  %v2483_v58 = vld [vmem:[%s5501_s2 + $0x1f8] sm:$0xff] }
 0x16a   :  { %2786 = vperm.xlu1 %3714, %v2480_v0   ;;  %2791 = vperm.xlu0 %3713, %v2481_v47  }
 0x16e   :  { %2796 = vperm.xlu1 %3714, %v2482_v57   ;;  %2801 = vperm.xlu0 %3713, %v2483_v58   ;;  %v3913_v57 = vld [vmem:[#allocation2 + $0x334] ss:$24 sps:$4 sm:$0xff]   ;;  %v3915_v58 = vld [vmem:[#allocation2 + $0x344] ss:$24 sps:$4 sm:$0xff]  }
 0x170   :  { %1467 = vmatmul.mubr.bf16.gmra.mrb[84].mxu1 %v3845_v63  ;;  %2140 = vmatmul.mubr.bf16.gmra.mrb[84].mxu0 %v3846_v1 }
 0x171   :  { %1474 = vmatprep.mubr.bf16.mxu1 %v3847_v2  ;;  %2147 = vmatprep.mubr.bf16.mxu0 %v3849_v3  ;;  %v3887_v2 = vld [vmem:[#allocation2 + $0x240] ss:$24 sps:$4 sm:$0xff]   ;;  %v3888_v3 = vld [vmem:[#allocation2 + $0x250] ss:$24 sps:$4 sm:$0xff]  }
 0x178   :  { %1475 = vmatmul.mubr.bf16.gmra.mrb[88].mxu1 %v3851_v8  ;;  %2148 = vmatmul.mubr.bf16.gmra.mrb[88].mxu0 %v3852_v9 }
 0x179   :  { %1482 = vmatprep.mubr.bf16.mxu1 %v3853_v10  ;;  %2155 = vmatprep.mubr.bf16.mxu0 %v3855_v11 }
 0x180   :  { %1483 = vmatmul.mubr.bf16.gmra.mrb[92].mxu1 %v3857_v16  ;;  %2156 = vmatmul.mubr.bf16.gmra.mrb[92].mxu0 %v3858_v17 }
 0x181   :  { %1490 = vmatprep.mubr.bf16.mxu1 %v3859_v18  ;;  %2163 = vmatprep.mubr.bf16.mxu0 %v3861_v19  ;;  %v3895_v18 = vld [vmem:[#allocation2 + $0x2a4] ss:$24 sps:$4 sm:$0xff]   ;;  %v3897_v19 = vld [vmem:[#allocation2 + $0x2b4] ss:$24 sps:$4 sm:$0xff]  }
 0x188   :  { %1491 = vmatmul.mubr.bf16.gmra.mrb[96].mxu1 %v3863_v24  ;;  %2164 = vmatmul.mubr.bf16.gmra.mrb[96].mxu0 %v3864_v25 }
 0x189   :  { %1498 = vmatprep.mubr.bf16.mxu1 %v3865_v26  ;;  %2171 = vmatprep.mubr.bf16.mxu0 %v3867_v27  ;;  %v3899_v26 = vld [vmem:[#allocation2 + $0x2a0] ss:$24 sps:$4 sm:$0xff]   ;;  %v3900_v27 = vld [vmem:[#allocation2 + $0x2b0] ss:$24 sps:$4 sm:$0xff]  }
 0x190   :  { %1499 = vmatmul.mubr.bf16.gmra.mrb[100].mxu1 %v3869_v32  ;;  %2172 = vmatmul.mubr.bf16.gmra.mrb[100].mxu0 %v3870_v33 }
 0x191   :  { %1506 = vmatprep.mubr.bf16.mxu1 %v3871_v35  ;;  %2179 = vmatprep.mubr.bf16.mxu0 %v3873_v36 }
 0x198   :  { %1507 = vmatmul.mubr.bf16.gmra.mrb[104].mxu1 %v3875_v41  ;;  %2180 = vmatmul.mubr.bf16.gmra.mrb[104].mxu0 %v3876_v42 }
 0x199   :  { %1514 = vmatprep.mubr.bf16.mxu1 %v3877_v43  ;;  %2187 = vmatprep.mubr.bf16.mxu0 %v3879_v44  ;;  %v3907_v43 = vld [vmem:[#allocation2 + $0x304] ss:$24 sps:$4 sm:$0xff]   ;;  %v3909_v44 = vld [vmem:[#allocation2 + $0x314] ss:$24 sps:$4 sm:$0xff]  }
 0x19b   :  { %v4797_v48 = vpop.f32.mrb[0].mxu0  ;;  %v4799_v49 = vpop.f32.mrb[0].mxu1 }
 0x19c   :  { %v821_v50 = vpop.f32.mrb[1].mxu0  ;;  %v949_v51 = vpop.f32.mrb[1].mxu1 }
 0x19d   :  { %v4801_v54 = vpop.f32.mrb[2].mxu0  ;;  %v4803_v55 = vpop.f32.mrb[2].mxu1  ;;  %v3911_v51 = vld [vmem:[#allocation2 + $0x300] ss:$24 sps:$4 sm:$0xff]  }
 0x19e   :  { %v824_v59 = vpop.f32.mrb[3].mxu0  ;;  %v952_v60 = vpop.f32.mrb[3].mxu1 }
 0x1a0   :  { %1515 = vmatmul.mubr.bf16.gmra.mrb[108].mxu1 %v3881_v34  ;;  %2188 = vmatmul.mubr.bf16.gmra.mrb[108].mxu0 %v3882_v52  ;;  %v3912_v52 = vld [vmem:[#allocation2 + $0x310] ss:$24 sps:$4 sm:$0xff]  }
 0x1a1   :  { %1522 = vmatprep.mubr.bf16.mxu1 %v3883_v53  ;;  %2195 = vmatprep.mubr.bf16.mxu0 %v3885_v56 }
 0x1a3   :  { %v4811_v61 = vpop.f32.mrb[4].mxu0  ;;  %v4813_v62 = vpop.f32.mrb[4].mxu1 }
 0x1a4   :  { %v829_v63 = vpop.f32.mrb[5].mxu0  ;;  %v957_v1 = vpop.f32.mrb[5].mxu1 }
 0x1a5   :  { %v4815_v4 = vpop.f32.mrb[6].mxu0  ;;  %v4817_v5 = vpop.f32.mrb[6].mxu1 }
 0x1a6   :  { %v832_v8 = vpop.f32.mrb[7].mxu0  ;;  %v960_v9 = vpop.f32.mrb[7].mxu1 }
 0x1a8   :  { %1523 = vmatmul.mubr.bf16.gmra.mrb[112].mxu1 %v3887_v2  ;;  %2196 = vmatmul.mubr.bf16.gmra.mrb[112].mxu0 %v3888_v3 }
 0x1a9   :  { %1530 = vmatprep.mubr.bf16.mxu1 %v3889_v6  ;;  %2203 = vmatprep.mubr.bf16.mxu0 %v3891_v7  ;;  %v3917_v6 = vld [vmem:[#allocation2 + $0x330] ss:$24 sps:$4 sm:$0xff]   ;;  %v3918_v7 = vld [vmem:[#allocation2 + $0x340] ss:$24 sps:$4 sm:$0xff]  }
 0x1ab   :  { %v4819_v10 = vpop.f32.mrb[8].mxu0  ;;  %v4821_v11 = vpop.f32.mrb[8].mxu1 }
 0x1ac   :  { %v837_v12 = vpop.f32.mrb[9].mxu0  ;;  %v965_v13 = vpop.f32.mrb[9].mxu1 }
 0x1ad   :  { %v4823_v16 = vpop.f32.mrb[10].mxu0  ;;  %v4825_v17 = vpop.f32.mrb[10].mxu1  ;;  %v3919_v12 = vld [vmem:[#allocation2 + $0x364] ss:$24 sps:$4 sm:$0xff]   ;;  %v3921_v13 = vld [vmem:[#allocation2 + $0x374] ss:$24 sps:$4 sm:$0xff]  }
 0x1ae   :  { %v840_v20 = vpop.f32.mrb[11].mxu0  ;;  %v968_v21 = vpop.f32.mrb[11].mxu1 }
 0x1b0   :  { %1531 = vmatmul.mubr.bf16.gmra.mrb[116].mxu1 %v3893_v14  ;;  %2204 = vmatmul.mubr.bf16.gmra.mrb[116].mxu0 %v3894_v15 }
 0x1b1   :  { %1538 = vmatprep.mubr.bf16.mxu1 %v3895_v18  ;;  %2211 = vmatprep.mubr.bf16.mxu0 %v3897_v19 }
 0x1b3   :  { %v4827_v22 = vpop.f32.mrb[12].mxu0  ;;  %v4829_v23 = vpop.f32.mrb[12].mxu1 }
 0x1b4   :  { %v845_v24 = vpop.f32.mrb[13].mxu0  ;;  %v973_v25 = vpop.f32.mrb[13].mxu1 }
 0x1b5   :  { %v4831_v28 = vpop.f32.mrb[14].mxu0  ;;  %v4833_v29 = vpop.f32.mrb[14].mxu1  ;;  %v3923_v24 = vld [vmem:[#allocation2 + $0x360] ss:$24 sps:$4 sm:$0xff]   ;;  %v3924_v25 = vld [vmem:[#allocation2 + $0x370] ss:$24 sps:$4 sm:$0xff]  }
 0x1b6   :  { %v848_v32 = vpop.f32.mrb[15].mxu0  ;;  %v976_v33 = vpop.f32.mrb[15].mxu1 }
 0x1b8   :  { %1539 = vmatmul.mubr.bf16.gmra.mrb[120].mxu1 %v3899_v26  ;;  %2212 = vmatmul.mubr.bf16.gmra.mrb[120].mxu0 %v3900_v27 }
 0x1b9   :  { %1546 = vmatprep.mubr.bf16.mxu1 %v3901_v30  ;;  %2219 = vmatprep.mubr.bf16.mxu0 %v3903_v31  ;;  %v3925_v30 = vld [vmem:[#allocation2 + $0x394] ss:$24 sps:$4 sm:$0xff]   ;;  %v3927_v31 = vld [vmem:[#allocation2 + $0x3a4] ss:$24 sps:$4 sm:$0xff]  }
 0x1bb   :  { %v4835_v35 = vpop.f32.mrb[16].mxu0  ;;  %v4837_v36 = vpop.f32.mrb[16].mxu1 }
 0x1bc   :  { %v853_v37 = vpop.f32.mrb[17].mxu0  ;;  %v981_v38 = vpop.f32.mrb[17].mxu1 }
 0x1bd   :  { %v4839_v41 = vpop.f32.mrb[18].mxu0  ;;  %v4841_v42 = vpop.f32.mrb[18].mxu1 }
 0x1be   :  { %5505 = vst [vmem:[#allocation5_spill] sm:$0xff] %v4841_v42  ;;  %v856_v45 = vpop.f32.mrb[19].mxu0  ;;  %v984_v46 = vpop.f32.mrb[19].mxu1 }
 0x1c0   :  { %1547 = vmatmul.mubr.bf16.gmra.mrb[124].mxu1 %v3905_v39  ;;  %2220 = vmatmul.mubr.bf16.gmra.mrb[124].mxu0 %v3906_v40 }
 0x1c1   :  { %1554 = vmatprep.mubr.bf16.mxu1 %v3907_v43  ;;  %2227 = vmatprep.mubr.bf16.mxu0 %v3909_v44  ;;  %v3929_v43 = vld [vmem:[#allocation2 + $0x390] ss:$24 sps:$4 sm:$0xff]   ;;  %v3930_v44 = vld [vmem:[#allocation2 + $0x3a0] ss:$24 sps:$4 sm:$0xff]  }
 0x1c3   :  { %v4843_v0 = vpop.f32.mrb[20].mxu0  ;;  %v4845_v47 = vpop.f32.mrb[20].mxu1 }
 0x1c4   :  { %5506 = vst [vmem:[#allocation6_spill] sm:$0xff] %v4845_v47  ;;  %v861_v34 = vpop.f32.mrb[21].mxu0  ;;  %v989_v50 = vpop.f32.mrb[21].mxu1 }
 0x1c5   :  { %v4847_v53 = vpop.f32.mrb[22].mxu0  ;;  %v4849_v56 = vpop.f32.mrb[22].mxu1  ;;  %v3931_v34 = vld [vmem:[#allocation2 + $0x3c4] ss:$24 sps:$4 sm:$0xff]   ;;  %v3933_v50 = vld [vmem:[#allocation2 + $0x3d4] ss:$24 sps:$4 sm:$0xff]  }
 0x1c6   :  { %5507 = vst [vmem:[#allocation7_spill] sm:$0xff] %v4849_v56  ;;  %v864_v59 = vpop.f32.mrb[23].mxu0  ;;  %v992_v60 = vpop.f32.mrb[23].mxu1 }
 0x1c7   :  { %v2492_v47 = vpop.permute.xlu1 %2491 }
 0x1c8   :  { %1555 = vmatmul.mubr.bf16.gmra.mrb[128].mxu1 %v3911_v51  ;;  %2228 = vmatmul.mubr.bf16.gmra.mrb[128].mxu0 %v3912_v52 }
 0x1c9   :  { %1562 = vmatprep.mubr.bf16.mxu1 %v3913_v57  ;;  %2235 = vmatprep.mubr.bf16.mxu0 %v3915_v58 }
 0x1cb   :  { %v4851_v63 = vpop.f32.mrb[24].mxu0  ;;  %v4853_v1 = vpop.f32.mrb[24].mxu1 }
 0x1cc   :  { %5508 = vst [vmem:[#allocation8_spill] sm:$0xff] %v4853_v1  ;;  %v869_v2 = vpop.f32.mrb[25].mxu0  ;;  %v997_v3 = vpop.f32.mrb[25].mxu1 }
 0x1cd   :  { %v4855_v8 = vpop.f32.mrb[26].mxu0  ;;  %v4857_v9 = vpop.f32.mrb[26].mxu1  ;;  %v3935_v2 = vld [vmem:[#allocation2 + $0x3c0] ss:$24 sps:$4 sm:$0xff]   ;;  %v3936_v3 = vld [vmem:[#allocation2 + $0x3d0] ss:$24 sps:$4 sm:$0xff]  }
 0x1ce   :  { %5509 = vst [vmem:[#allocation9_spill] sm:$0xff] %v4857_v9  ;;  %v872_v14 = vpop.f32.mrb[27].mxu0  ;;  %v1000_v15 = vpop.f32.mrb[27].mxu1 }
 0x1d0   :  { %1563 = vmatmul.mubr.bf16.gmra.mrb[132].mxu1 %v3917_v6  ;;  %2236 = vmatmul.mubr.bf16.gmra.mrb[132].mxu0 %v3918_v7 }
 0x1d1   :  { %1570 = vmatprep.mubr.bf16.mxu1 %v3919_v12  ;;  %2243 = vmatprep.mubr.bf16.mxu0 %v3921_v13  ;;  %v3937_v12 = vld [vmem:[#allocation2 + $0x3f4] ss:$24 sps:$4 sm:$0xff]   ;;  %v3939_v13 = vld [vmem:[#allocation2 + $0x404] ss:$24 sps:$4 sm:$0xff]  }
 0x1d3   :  { %v4859_v18 = vpop.f32.mrb[28].mxu0  ;;  %v4861_v19 = vpop.f32.mrb[28].mxu1 }
 0x1d4   :  { %5510 = vst [vmem:[#allocation10_spill] sm:$0xff] %v4861_v19  ;;  %v877_v20 = vpop.f32.mrb[29].mxu0  ;;  %v1005_v21 = vpop.f32.mrb[29].mxu1 }
 0x1d5   :  { %v4863_v26 = vpop.f32.mrb[30].mxu0  ;;  %v4865_v27 = vpop.f32.mrb[30].mxu1 }
 0x1d6   :  { %5511 = vst [vmem:[#allocation11_spill] sm:$0xff] %v4865_v27  ;;  %v880_v32 = vpop.f32.mrb[31].mxu0  ;;  %v1008_v33 = vpop.f32.mrb[31].mxu1 }
 0x1d8   :  { %1571 = vmatmul.mubr.bf16.gmra.mrb[136].mxu1 %v3923_v24  ;;  %2244 = vmatmul.mubr.bf16.gmra.mrb[136].mxu0 %v3924_v25 }
 0x1d9   :  { %1578 = vmatprep.mubr.bf16.mxu1 %v3925_v30  ;;  %2251 = vmatprep.mubr.bf16.mxu0 %v3927_v31  ;;  %v3941_v30 = vld [vmem:[#allocation2 + $0x3f0] ss:$24 sps:$4 sm:$0xff]   ;;  %v3942_v31 = vld [vmem:[#allocation2 + $0x400] ss:$24 sps:$4 sm:$0xff]  }
 0x1db   :  { %v4867_v37 = vpop.f32.mrb[32].mxu0  ;;  %v4869_v38 = vpop.f32.mrb[32].mxu1 }
 0x1dc   :  { %5512 = vst [vmem:[#allocation12_spill] sm:$0xff] %v4869_v38  ;;  %v885_v39 = vpop.f32.mrb[33].mxu0  ;;  %v1013_v40 = vpop.f32.mrb[33].mxu1 }
 0x1dd   :  { %v4871_v45 = vpop.f32.mrb[34].mxu0  ;;  %v4873_v46 = vpop.f32.mrb[34].mxu1  ;;  %v3943_v39 = vld [vmem:[#allocation2 + $0x424] ss:$24 sps:$4 sm:$0xff]   ;;  %v3945_v40 = vld [vmem:[#allocation2 + $0x434] ss:$24 sps:$4 sm:$0xff]  }
 0x1de   :  { %5513 = vst [vmem:[#allocation13_spill] sm:$0xff] %v4873_v46  ;;  %v888_v51 = vpop.f32.mrb[35].mxu0  ;;  %v1016_v52 = vpop.f32.mrb[35].mxu1 }
 0x1e0   :  { %1579 = vmatmul.mubr.bf16.gmra.mrb[140].mxu1 %v3929_v43  ;;  %2252 = vmatmul.mubr.bf16.gmra.mrb[140].mxu0 %v3930_v44 }
 0x1e1   :  { %1586 = vmatprep.mubr.bf16.mxu1 %v3931_v34  ;;  %2259 = vmatprep.mubr.bf16.mxu0 %v3933_v50 }
 0x1e3   :  { %v4875_v57 = vpop.f32.mrb[36].mxu0  ;;  %v4877_v58 = vpop.f32.mrb[36].mxu1 }
 0x1e4   :  { %5514 = vst [vmem:[#allocation14_spill] sm:$0xff] %v4877_v58  ;;  %v893_v59 = vpop.f32.mrb[37].mxu0  ;;  %v1021_v60 = vpop.f32.mrb[37].mxu1  ;;  %v3975_v58 = vld [vmem:[#allocation2 + $0x524] ss:$24 sps:$4 sm:$0xff]  }
 0x1e5   :  { %v4879_v6 = vpop.f32.mrb[38].mxu0  ;;  %v4881_v7 = vpop.f32.mrb[38].mxu1  ;;  %v3947_v59 = vld [vmem:[#allocation2 + $0x420] ss:$24 sps:$4 sm:$0xff]   ;;  %v3948_v60 = vld [vmem:[#allocation2 + $0x430] ss:$24 sps:$4 sm:$0xff]  }
 0x1e6   :  { %5515 = vst [vmem:[#allocation15_spill] sm:$0xff] %v4881_v7  ;;  %v896_v14 = vpop.f32.mrb[39].mxu0  ;;  %v1024_v15 = vpop.f32.mrb[39].mxu1 }
 0x1e8   :  { %1587 = vmatmul.mubr.bf16.gmra.mrb[144].mxu1 %v3935_v2  ;;  %2260 = vmatmul.mubr.bf16.gmra.mrb[144].mxu0 %v3936_v3 }
 0x1e9   :  { %1594 = vmatprep.mubr.bf16.mxu1 %v3937_v12  ;;  %2267 = vmatprep.mubr.bf16.mxu0 %v3939_v13  ;;  %v3949_v12 = vld [vmem:[#allocation2 + $0x454] ss:$24 sps:$4 sm:$0xff]   ;;  %v3951_v13 = vld [vmem:[#allocation2 + $0x464] ss:$24 sps:$4 sm:$0xff]  }
 0x1eb   :  { %v4883_v20 = vpop.f32.mrb[40].mxu0  ;;  %v4885_v21 = vpop.f32.mrb[40].mxu1 }
 0x1ec   :  { %5516 = vst [vmem:[#allocation16_spill] sm:$0xff] %v4885_v21  ;;  %v901_v24 = vpop.f32.mrb[41].mxu0  ;;  %v1029_v25 = vpop.f32.mrb[41].mxu1  ;;  %v3969_v21 = vld [vmem:[#allocation2 + $0x4f4] ss:$24 sps:$4 sm:$0xff]  }
 0x1ed   :  { %v4887_v32 = vpop.f32.mrb[42].mxu0  ;;  %v4889_v33 = vpop.f32.mrb[42].mxu1 }
 0x1ee   :  { %5517 = vst [vmem:[#allocation17_spill] sm:$0xff] %v4889_v33  ;;  %v904_v43 = vpop.f32.mrb[43].mxu0  ;;  %v1032_v44 = vpop.f32.mrb[43].mxu1 }
 0x1f0   :  { %1595 = vmatmul.mubr.bf16.gmra.mrb[148].mxu1 %v3941_v30  ;;  %2268 = vmatmul.mubr.bf16.gmra.mrb[148].mxu0 %v3942_v31 }
 0x1f1   :  { %1602 = vmatprep.mubr.bf16.mxu1 %v3943_v39  ;;  %2275 = vmatprep.mubr.bf16.mxu0 %v3945_v40  ;;  %v3953_v39 = vld [vmem:[#allocation2 + $0x450] ss:$24 sps:$4 sm:$0xff]   ;;  %v3954_v40 = vld [vmem:[#allocation2 + $0x460] ss:$24 sps:$4 sm:$0xff]  }
 0x1f3   :  { %v4891_v34 = vpop.f32.mrb[44].mxu0  ;;  %v4893_v50 = vpop.f32.mrb[44].mxu1 }
 0x1f4   :  { %5518 = vst [vmem:[#allocation18_spill] sm:$0xff] %v4893_v50  ;;  %v909_v51 = vpop.f32.mrb[45].mxu0  ;;  %v1037_v52 = vpop.f32.mrb[45].mxu1  ;;  %v3963_v50 = vld [vmem:[#allocation2 + $0x4c4] ss:$24 sps:$4 sm:$0xff]  }
 0x1f5   :  { %v4895_v2 = vpop.f32.mrb[46].mxu0  ;;  %v4897_v3 = vpop.f32.mrb[46].mxu1  ;;  %v3955_v51 = vld [vmem:[#allocation2 + $0x484] ss:$24 sps:$4 sm:$0xff]   ;;  %v3957_v52 = vld [vmem:[#allocation2 + $0x494] ss:$24 sps:$4 sm:$0xff]  }
 0x1f6   :  { %5519 = vst [vmem:[#allocation19_spill] sm:$0xff] %v4897_v3  ;;  %v912_v14 = vpop.f32.mrb[47].mxu0  ;;  %v1040_v15 = vpop.f32.mrb[47].mxu1 }
 0x1f8   :  { %1603 = vmatmul.mubr.bf16.gmra.mrb[152].mxu1 %v3947_v59  ;;  %2276 = vmatmul.mubr.bf16.gmra.mrb[152].mxu0 %v3948_v60 }
 0x1f9   :  { %1610 = vmatprep.mubr.bf16.mxu1 %v3949_v12  ;;  %2283 = vmatprep.mubr.bf16.mxu0 %v3951_v13 }
 0x1fb   :  { %v4899_v24 = vpop.f32.mrb[48].mxu0  ;;  %v4901_v25 = vpop.f32.mrb[48].mxu1 }
 0x1fc   :  { %5520 = vst [vmem:[#allocation20_spill] sm:$0xff] %v4901_v25  ;;  %v917_v30 = vpop.f32.mrb[49].mxu0  ;;  %v1045_v31 = vpop.f32.mrb[49].mxu1 }
 0x1fd   :  { %v4903_v43 = vpop.f32.mrb[50].mxu0  ;;  %v4905_v44 = vpop.f32.mrb[50].mxu1  ;;  %v3959_v30 = vld [vmem:[#allocation2 + $0x480] ss:$24 sps:$4 sm:$0xff]   ;;  %v3960_v31 = vld [vmem:[#allocation2 + $0x490] ss:$24 sps:$4 sm:$0xff]  }
 0x1fe   :  { %5521 = vst [vmem:[#allocation21_spill] sm:$0xff] %v4905_v44  ;;  %v920_v14 = vpop.f32.mrb[51].mxu0  ;;  %v1048_v15 = vpop.f32.mrb[51].mxu1  ;;  %v3961_v44 = vld [vmem:[#allocation2 + $0x4b4] ss:$24 sps:$4 sm:$0xff]  }
 0x200   :  { %1611 = vmatmul.mubr.bf16.gmra.mrb[156].mxu1 %v3953_v39  ;;  %2284 = vmatmul.mubr.bf16.gmra.mrb[156].mxu0 %v3954_v40 }
 0x201   :  { %1618 = vmatprep.mubr.bf16.mxu1 %v3955_v51  ;;  %2291 = vmatprep.mubr.bf16.mxu0 %v3957_v52 }
 0x203   :  { %v4907_v59 = vpop.f32.mrb[52].mxu0  ;;  %v4909_v60 = vpop.f32.mrb[52].mxu1 }
 0x204   :  { %5522 = vst [vmem:[#allocation22_spill] sm:$0xff] %v4909_v60  ;;  %v925_v12 = vpop.f32.mrb[53].mxu0  ;;  %v1053_v13 = vpop.f32.mrb[53].mxu1 }
 0x205   :  { %v4911_v25 = vpop.f32.mrb[54].mxu0  ;;  %v4913_v3 = vpop.f32.mrb[54].mxu1  ;;  %v3965_v12 = vld [vmem:[#allocation2 + $0x4b0] ss:$24 sps:$4 sm:$0xff]   ;;  %v3966_v13 = vld [vmem:[#allocation2 + $0x4c0] ss:$24 sps:$4 sm:$0xff]  }
 0x206   :  { %5523 = vst [vmem:[#allocation23_spill] sm:$0xff] %v4913_v3  ;;  %v928_v14 = vpop.f32.mrb[55].mxu0  ;;  %v1056_v15 = vpop.f32.mrb[55].mxu1  ;;  %v3967_v3 = vld [vmem:[#allocation2 + $0x4e4] ss:$24 sps:$4 sm:$0xff]  }
 0x208   :  { %1619 = vmatmul.mubr.bf16.gmra.mrb[160].mxu1 %v3959_v30  ;;  %2292 = vmatmul.mubr.bf16.gmra.mrb[160].mxu0 %v3960_v31 }
 0x209   :  { %1626 = vmatprep.mubr.bf16.mxu1 %v3961_v44  ;;  %2299 = vmatprep.mubr.bf16.mxu0 %v3963_v50 }
 0x20b   :  { %v4915_v39 = vpop.f32.mrb[56].mxu0  ;;  %v4917_v40 = vpop.f32.mrb[56].mxu1 }
 0x20c   :  { %5524 = vst [vmem:[#allocation24_spill] sm:$0xff] %v4917_v40  ;;  %v933_v51 = vpop.f32.mrb[57].mxu0  ;;  %v1061_v52 = vpop.f32.mrb[57].mxu1 }
 0x20d   :  { %v4919_v60 = vpop.f32.mrb[58].mxu0  ;;  %v4921_v33 = vpop.f32.mrb[58].mxu1  ;;  %v3971_v51 = vld [vmem:[#allocation2 + $0x4e0] ss:$24 sps:$4 sm:$0xff]   ;;  %v3972_v52 = vld [vmem:[#allocation2 + $0x4f0] ss:$24 sps:$4 sm:$0xff]  }
 0x20e   :  { %5525 = vst [vmem:[#allocation25_spill] sm:$0xff] %v4921_v33  ;;  %v936_v14 = vpop.f32.mrb[59].mxu0  ;;  %v1064_v15 = vpop.f32.mrb[59].mxu1  ;;  %v3973_v33 = vld [vmem:[#allocation2 + $0x514] ss:$24 sps:$4 sm:$0xff]  }
 0x210   :  { %1627 = vmatmul.mubr.bf16.gmra.mrb[164].mxu1 %v3965_v12  ;;  %2300 = vmatmul.mubr.bf16.gmra.mrb[164].mxu0 %v3966_v13  ;;  %v1737_v12 = vld [vmem:[#allocation2 + $0x520] sm:$0xff]  ;;  %v1738_v13 = vld [vmem:[#allocation2 + $0x538] sm:$0xff] }
 0x211   :  { %1634 = vmatprep.mubr.bf16.mxu1 %v3967_v3  ;;  %2307 = vmatprep.mubr.bf16.mxu0 %v3969_v21  ;;  %v391_v3 = vld [vmem:[#allocation2 + $0x510] sm:$0xff]  ;;  %v392_v21 = vld [vmem:[#allocation2 + $0x528] sm:$0xff]  ;;  %v3600_v19 = vcombine.low %v1737_v12, %v1738_v13  ;;  %v3985_v12 = vld [vmem:[#allocation2 + $0x584] ss:$24 sps:$4 sm:$0xff]  }
 0x213   :  { %v4923_v50 = vpop.f32.mrb[60].mxu0  ;;  %v4925_v44 = vpop.f32.mrb[60].mxu1 }
 0x214   :  { %5526 = vst [vmem:[#allocation26_spill] sm:$0xff] %v4925_v44  ;;  %v941_v30 = vpop.f32.mrb[61].mxu0  ;;  %v1069_v31 = vpop.f32.mrb[61].mxu1 }
 0x215   :  { %v4927_v40 = vpop.f32.mrb[62].mxu0  ;;  %v4929_v7 = vpop.f32.mrb[62].mxu1 }
 0x216   :  { %5527 = vst [vmem:[#allocation27_spill] sm:$0xff] %v4929_v7  ;;  %v944_v14 = vpop.f32.mrb[63].mxu0  ;;  %v1072_v15 = vpop.f32.mrb[63].mxu1  ;;  %v3504_v7 = vcombine.low %v391_v3, %v392_v21  ;;  %v3981_v21 = vld [vmem:[#allocation2 + $0x540] ss:$24 sps:$4 sm:$0xff]  }
 0x217   :  { %v2487_v30 = vpop.permute.xlu0 %2486  ;;  %v3977_v15 = vld [vmem:[#allocation2 + $0x544] ss:$24 sps:$4 sm:$0xff]  }
 0x218   :  { %1635 = vmatmul.mubr.bf16.gmra.mrb[168].mxu1 %v3971_v51  ;;  %2308 = vmatmul.mubr.bf16.gmra.mrb[168].mxu0 %v3972_v52  ;;  %v3979_v51 = vld [vmem:[#allocation2 + $0x554] ss:$24 sps:$4 sm:$0xff]  }
 0x219   :  { %1642 = vmatprep.mubr.bf16.mxu1 %v3973_v33  ;;  %2315 = vmatprep.mubr.bf16.mxu0 %v3975_v58 }
 0x21b   :  { %v1428_v31 = vpop.f32.mrb[64].mxu1  ;;  %v2101_v44 = vpop.f32.mrb[64].mxu0 }
 0x21c   :  { %v1429_v46 = vadd.f32 %v1428_v31, %v4797_v48  ;;  %v1430_v38 = vpop.f32.mrb[65].mxu1  ;;  %v2103_v27 = vpop.f32.mrb[65].mxu0 }
 0x21d   :  { %v1431_v9 = vpop.f32.mrb[66].mxu1  ;;  %v2104_v14 = vpop.f32.mrb[66].mxu0 }
 0x21e   :  { %v2356_v52 = vadd.f32 %v2101_v44, %v1429_v46  ;;  %v1432_v1 = vadd.f32 %v1431_v9, %v4801_v54  ;;  %v1433_v33 = vpop.f32.mrb[67].mxu1  ;;  %v2106_v56 = vpop.f32.mrb[67].mxu0  ;;  %v3982_v46 = vld [vmem:[#allocation2 + $0x550] ss:$24 sps:$4 sm:$0xff]  }
 0x220   :  { %v2357_v58 = vadd.f32 %v2104_v14, %v1432_v1  ;;  %v4933_v42 = vadd.f32 %v2487_v30, %v2356_v52  ;;  %1643 = vmatmul.mubr.bf16.gmra.mrb[172].mxu1 %v3504_v7  ;;  %2316 = vmatmul.mubr.bf16.gmra.mrb[172].mxu0 %v3600_v19  ;;  %v3983_v19 = vld [vmem:[#allocation2 + $0x574] ss:$24 sps:$4 sm:$0xff]   ;;  %v2497_v14 = vpop.permute.xlu1 %2496 }
 0x221   :  { %1650 = vmatprep.mubr.bf16.mxu1 %v3977_v15  ;;  %2323 = vmatprep.mubr.bf16.mxu0 %v3979_v51 }
 0x222   :  { %v3610_v48 = vmul.f32 -1.442695, %v4933_v42  ;;  %v4936_v27 = vadd.f32 %v2492_v47, %v2357_v58 }
 0x223   :  { %v1436_v38 = vpop.f32.mrb[68].mxu1  ;;  %v2109_v3 = vpop.f32.mrb[68].mxu0 }
 0x224   :  { %4001 = vpow2.f32 %v3610_v48  ;;  %v3611_v54 = vmul.f32 -1.442695, %v4936_v27  ;;  %v1437_v56 = vadd.f32 %v1436_v38, %v4811_v61  ;;  %v1438_v9 = vpop.f32.mrb[69].mxu1  ;;  %v2111_v1 = vpop.f32.mrb[69].mxu0  ;;  %v3987_v38 = vld [vmem:[#allocation2 + $0x570] ss:$24 sps:$4 sm:$0xff]  }
 0x225   :  { %v1439_v44 = vpop.f32.mrb[70].mxu1  ;;  %v2112_v7 = vpop.f32.mrb[70].mxu0  ;;  %v3988_v9 = vld [vmem:[#allocation2 + $0x580] ss:$24 sps:$4 sm:$0xff]  }
 0x226   :  { %4003 = vpow2.f32 %v3611_v54  ;;  %v2358_v13 = vadd.f32 %v2109_v3, %v1437_v56  ;;  %v1440_v47 = vadd.f32 %v1439_v44, %v4815_v4  ;;  %v1441_v30 = vpop.f32.mrb[71].mxu1  ;;  %v2114_v31 = vpop.f32.mrb[71].mxu0  ;;  %v3991_v44 = vld [vmem:[#allocation2 + $0x5b4] ss:$24 sps:$4 sm:$0xff]  }
 0x227   :  { %v2502_v61 = vpop.permute.xlu0 %2501  ;;  %v2507_v31 = vpop.permute.xlu1 %2506 }
 0x228   :  { %v2359_v15 = vadd.f32 %v2112_v7, %v1440_v47  ;;  %v4941_v51 = vadd.f32 %v2497_v14, %v2358_v13  ;;  %1651 = vmatmul.mubr.bf16.gmra.mrb[176].mxu1 %v3981_v21  ;;  %2324 = vmatmul.mubr.bf16.gmra.mrb[176].mxu0 %v3982_v46  ;;  %v3989_v46 = vld [vmem:[#allocation2 + $0x5a4] ss:$24 sps:$4 sm:$0xff]  }
 0x229   :  { %1658 = vmatprep.mubr.bf16.mxu1 %v3983_v19  ;;  %2331 = vmatprep.mubr.bf16.mxu0 %v3985_v12 }
 0x22a   :  { %v3612_v52 = vmul.f32 -1.442695, %v4941_v51  ;;  %v4944_v33 = vadd.f32 %v2502_v61, %v2359_v15 }
 0x22b   :  { %v1444_v58 = vpop.f32.mrb[72].mxu1  ;;  %v2117_v48 = vpop.f32.mrb[72].mxu0 }
 0x22c   :  { %4005 = vpow2.f32 %v3612_v52  ;;  %v3613_v4 = vmul.f32 -1.442695, %v4944_v33  ;;  %v1445_v3 = vadd.f32 %v1444_v58, %v4819_v10  ;;  %v1446_v54 = vpop.f32.mrb[73].mxu1  ;;  %v2119_v56 = vpop.f32.mrb[73].mxu0 }
 0x22d   :  { %v1447_v21 = vpop.f32.mrb[74].mxu1  ;;  %v2120_v1 = vpop.f32.mrb[74].mxu0 }
 0x22e   :  { %v4002_v7 = vpop.eup %4001  ;;  %4007 = vpow2.f32 %v3613_v4  ;;  %v2360_v19 = vadd.f32 %v2117_v48, %v1445_v3  ;;  %v1448_v12 = vadd.f32 %v1447_v21, %v4823_v16  ;;  %v1449_v13 = vpop.f32.mrb[75].mxu1  ;;  %v3993_v3 = vld [vmem:[#allocation2 + $0x5a0] ss:$24 sps:$4 sm:$0xff]   ;;  %v3994_v21 = vld [vmem:[#allocation2 + $0x5b0] ss:$24 sps:$4 sm:$0xff]  }
 0x22f   :  { %v2122_v47 = vpop.f32.mrb[75].mxu0  ;;  %v3060_v30 = vadd.f32 1.0, %v4002_v7  ;;  %v2512_v52 = vpop.permute.xlu0 %2511 }
 0x230   :  { %v4004_v14 = vpop.eup %4003  ;;  %v4949_v15 = vadd.f32 %v2507_v31, %v2360_v19  ;;  %v2361_v10 = vadd.f32 %v2120_v1, %v1448_v12  ;;  %1659 = vmatmul.mubr.bf16.gmra.mrb[180].mxu1 %v3987_v38  ;;  %2332 = vmatmul.mubr.bf16.gmra.mrb[180].mxu0 %v3988_v9 }
 0x231   :  { %4009 = vrcp.f32 %v3060_v30  ;;  %v3061_v61 = vadd.f32 1.0, %v4004_v14  ;;  %1666 = vmatprep.mubr.bf16.mxu1 %v3989_v46  ;;  %2339 = vmatprep.mubr.bf16.mxu0 %v3991_v44  ;;  %v3995_v46 = vld [vmem:[#allocation2 + $0x5d4] ss:$24 sps:$4 sm:$0xff]   ;;  %v3997_v44 = vld [vmem:[#allocation2 + $0x5e4] ss:$24 sps:$4 sm:$0xff]   ;;  %v2517_v14 = vpop.permute.xlu1 %2516 }
 0x232   :  { %v3614_v58 = vmul.f32 -1.442695, %v4949_v15  ;;  %v4952_v48 = vadd.f32 %v2512_v52, %v2361_v10 }
 0x233   :  { %4011 = vrcp.f32 %v3061_v61  ;;  %v1452_v16 = vpop.f32.mrb[76].mxu1  ;;  %v2125_v4 = vpop.f32.mrb[76].mxu0 }
 0x234   :  { %4013 = vpow2.f32 %v3614_v58  ;;  %v3615_v54 = vmul.f32 -1.442695, %v4952_v48  ;;  %v1453_v56 = vadd.f32 %v1452_v16, %v4827_v22  ;;  %v1454_v38 = vpop.f32.mrb[77].mxu1  ;;  %v2127_v9 = vpop.f32.mrb[77].mxu0 }
 0x235   :  { %v1455_v1 = vpop.f32.mrb[78].mxu1  ;;  %v2128_v7 = vpop.f32.mrb[78].mxu0  ;;  %v3999_v38 = vld [vmem:[#allocation2 + $0x5d0] ss:$24 sps:$4 sm:$0xff]  }
 0x236   :  { %v4006_v19 = vpop.eup %4005  ;;  %4015 = vpow2.f32 %v3615_v54  ;;  %v2362_v12 = vadd.f32 %v2125_v4, %v1453_v56  ;;  %v1456_v13 = vadd.f32 %v1455_v1, %v4831_v28  ;;  %v1457_v47 = vpop.f32.mrb[79].mxu1 }
 0x237   :  { %v2130_v30 = vpop.f32.mrb[79].mxu0  ;;  %v3062_v31 = vadd.f32 1.0, %v4006_v19  ;;  %v2522_v58 = vpop.permute.xlu0 %2521 }
 0x238   :  { %v4008_v10 = vpop.eup %4007  ;;  %v4957_v61 = vadd.f32 %v2517_v14, %v2362_v12  ;;  %v2363_v22 = vadd.f32 %v2128_v7, %v1456_v13  ;;  %1667 = vmatmul.mubr.bf16.gmra.mrb[184].mxu1 %v3993_v3  ;;  %2340 = vmatmul.mubr.bf16.gmra.mrb[184].mxu0 %v3994_v21 }
 0x239   :  { %4017 = vrcp.f32 %v3062_v31  ;;  %v3063_v52 = vadd.f32 1.0, %v4008_v10  ;;  %1674 = vmatprep.mubr.bf16.mxu1 %v3995_v46  ;;  %2347 = vmatprep.mubr.bf16.mxu0 %v3997_v44  ;;  %v4000_v46 = vld [vmem:[#allocation2 + $0x5e0] ss:$24 sps:$4 sm:$0xff]   ;;  %v2527_v10 = vpop.permute.xlu1 %2526 }
 0x23a   :  { %v3616_v16 = vmul.f32 -1.442695, %v4957_v61  ;;  %v4960_v4 = vadd.f32 %v2522_v58, %v2363_v22 }
 0x23b   :  { %v4010_v28 = vpop.eup %4009  ;;  %4019 = vrcp.f32 %v3063_v52  ;;  %v1460_v54 = vpop.f32.mrb[80].mxu1 }
 0x23c   :  { %v2133_v56 = vpop.f32.mrb[80].mxu0  ;;  %v3252_v9 = vmul.f32 %v4010_v28, %v4933_v42  ;;  %4021 = vpow2.f32 %v3616_v16  ;;  %v3617_v3 = vmul.f32 -1.442695, %v4960_v4  ;;  %v1461_v21 = vadd.f32 %v1460_v54, %v4835_v35  ;;  %v1462_v1 = vpop.f32.mrb[81].mxu1 }
 0x23d   :  { %v2135_v7 = vpop.f32.mrb[81].mxu0  ;;  %v4012_v44 = vpop.eup %4011 }
 0x23e   :  { %v1463_v19 = vpop.f32.mrb[82].mxu1  ;;  %v2136_v12 = vpop.f32.mrb[82].mxu0  ;;  %3317 = vst.msk [vmem:[%s5502_s3] sm:$0xff] %vm3316_vm4, %v3252_v9  ;;  %v3253_v47 = vmul.f32 %v4012_v44, %v4936_v27  ;;  %4023 = vpow2.f32 %v3617_v3  ;;  %v2364_v42 = vadd.f32 %v2133_v56, %v1461_v21 }
 0x23f   :  { %v4014_v13 = vpop.eup %4013  ;;  %v1464_v30 = vadd.f32 %v1463_v19, %v4839_v41  ;;  %v1465_v31 = vpop.f32.mrb[83].mxu1 }
 0x240   :  { %v2138_v35 = vpop.f32.mrb[83].mxu0  ;;  %v3064_v14 = vadd.f32 1.0, %v4014_v13  ;;  %v4016_v22 = vpop.eup %4015  ;;  %3318 = vst.msk [vmem:[%s5502_s3 + $0x8] sm:$0xff] %vm3316_vm4, %v3253_v47  ;;  %v4975_v52 = vadd.f32 %v2527_v10, %v2364_v42  ;;  %1675 = vmatmul.mubr.bf16.gmra.mrb[188].mxu1 %v3999_v38  ;;  %2348 = vmatmul.mubr.bf16.gmra.mrb[188].mxu0 %v4000_v46 }
 0x241   :  { %v2365_v58 = vadd.f32 %v2136_v12, %v1464_v30  ;;  %v3065_v27 = vadd.f32 1.0, %v4016_v22  ;;  %v2532_v16 = vpop.permute.xlu0 %2531  ;;  %v2537_v31 = vpop.permute.xlu1 %2536 }
 0x242   :  { %4025 = vrcp.f32 %v3064_v14  ;;  %v3618_v41 = vmul.f32 -1.442695, %v4975_v52 }
 0x243   :  { %v4978_v28 = vadd.f32 %v2532_v16, %v2365_v58  ;;  %v4018_v54 = vpop.eup %4017  ;;  %4027 = vrcp.f32 %v3065_v27  ;;  %v1468_v56 = vpop.f32.mrb[84].mxu1 }
 0x244   :  { %v2141_v9 = vpop.f32.mrb[84].mxu0  ;;  %v3254_v3 = vmul.f32 %v4018_v54, %v4941_v51  ;;  %4029 = vpow2.f32 %v3618_v41  ;;  %v1469_v1 = vadd.f32 %v1468_v56, %v4843_v0  ;;  %v1470_v38 = vpop.f32.mrb[85].mxu1 }
 0x245   :  { %v3619_v21 = vmul.f32 -1.442695, %v4978_v28  ;;  %v2143_v7 = vpop.f32.mrb[85].mxu0  ;;  %v4020_v46 = vpop.eup %4019 }
 0x246   :  { %v1471_v44 = vpop.f32.mrb[86].mxu1  ;;  %v2144_v19 = vpop.f32.mrb[86].mxu0  ;;  %3319 = vst.msk [vmem:[%s5502_s3 + $0x10] sm:$0xff] %vm3316_vm4, %v3254_v3  ;;  %v3255_v13 = vmul.f32 %v4020_v46, %v4944_v33  ;;  %v2366_v51 = vadd.f32 %v2141_v9, %v1469_v1 }
 0x247   :  { %v4022_v12 = vpop.eup %4021  ;;  %4031 = vpow2.f32 %v3619_v21  ;;  %v1472_v47 = vadd.f32 %v1471_v44, %v4847_v53  ;;  %v1473_v42 = vpop.f32.mrb[87].mxu1 }
 0x248   :  { %v2146_v30 = vpop.f32.mrb[87].mxu0  ;;  %v3066_v0 = vadd.f32 1.0, %v4022_v12  ;;  %v4024_v35 = vpop.eup %4023  ;;  %3320 = vst.msk [vmem:[%s5502_s3 + $0x18] sm:$0xff] %vm3316_vm4, %v3255_v13  ;;  %v4993_v14 = vadd.f32 %v2537_v31, %v2366_v51 }
 0x249   :  { %v2367_v10 = vadd.f32 %v2144_v19, %v1472_v47  ;;  %v3067_v22 = vadd.f32 1.0, %v4024_v35  ;;  %v2542_v33 = vpop.permute.xlu0 %2541 }
 0x24a   :  { %4033 = vrcp.f32 %v3066_v0  ;;  %v3620_v58 = vmul.f32 -1.442695, %v4993_v14 }
 0x24b   :  { %v4996_v27 = vadd.f32 %v2542_v33, %v2367_v10  ;;  %4035 = vrcp.f32 %v3067_v22  ;;  %v1476_v16 = vpop.f32.mrb[88].mxu1  ;;  %v2149_v41 = vpop.f32.mrb[88].mxu0 }
 0x24c   :  { %v4026_v53 = vpop.eup %4025  ;;  %4037 = vpow2.f32 %v3620_v58  ;;  %v1477_v9 = vadd.f32 %v1476_v16, %v4851_v63  ;;  %v1478_v3 = vpop.f32.mrb[89].mxu1 }
 0x24d   :  { %v3256_v54 = vmul.f32 %v4026_v53, %v4949_v15  ;;  %v3621_v56 = vmul.f32 -1.442695, %v4996_v27  ;;  %v2151_v21 = vpop.f32.mrb[89].mxu0  ;;  %v4028_v1 = vpop.eup %4027 }
 0x24e   :  { %v1479_v38 = vpop.f32.mrb[90].mxu1  ;;  %v2152_v7 = vpop.f32.mrb[90].mxu0  ;;  %v3257_v44 = vmul.f32 %v4028_v1, %v4952_v48  ;;  %v2368_v15 = vadd.f32 %v2149_v41, %v1477_v9 }
 0x24f   :  { %v4030_v46 = vpop.eup %4029  ;;  %3321 = vst.msk [vmem:[%s5502_s3 + $0x20] sm:$0xff] %vm3316_vm4, %v3256_v54  ;;  %4039 = vpow2.f32 %v3621_v56  ;;  %v1480_v19 = vadd.f32 %v1479_v38, %v4855_v8  ;;  %v1481_v12 = vpop.f32.mrb[91].mxu1 }
 0x250   :  { %v2154_v13 = vpop.f32.mrb[91].mxu0  ;;  %v2547_v63 = vpop.permute.xlu1 %2546  ;;  %v3068_v51 = vadd.f32 1.0, %v4030_v46  ;;  %3322 = vst.msk [vmem:[%s5502_s3 + $0x28] sm:$0xff] %vm3316_vm4, %v3257_v44 }
 0x251   :  { %v4032_v47 = vpop.eup %4031  ;;  %v5011_v42 = vadd.f32 %v2547_v63, %v2368_v15  ;;  %v2369_v30 = vadd.f32 %v2152_v7, %v1480_v19  ;;  %v2552_v0 = vpop.permute.xlu0 %2551 }
 0x252   :  { %4041 = vrcp.f32 %v3068_v51  ;;  %v3069_v48 = vadd.f32 1.0, %v4032_v47 }
 0x253   :  { %v3622_v31 = vmul.f32 -1.442695, %v5011_v42  ;;  %v5014_v35 = vadd.f32 %v2552_v0, %v2369_v30  ;;  %v1484_v10 = vpop.f32.mrb[92].mxu1  ;;  %v2157_v22 = vpop.f32.mrb[92].mxu0 }
 0x254   :  { %v4034_v8 = vpop.eup %4033  ;;  %4043 = vrcp.f32 %v3069_v48  ;;  %v1485_v53 = vadd.f32 %v1484_v10, %v4859_v18  ;;  %v1486_v16 = vpop.f32.mrb[93].mxu1 }
 0x255   :  { %v3258_v33 = vmul.f32 %v4034_v8, %v4957_v61  ;;  %4045 = vpow2.f32 %v3622_v31  ;;  %v3623_v58 = vmul.f32 -1.442695, %v5014_v35  ;;  %v2159_v41 = vpop.f32.mrb[93].mxu0  ;;  %v4036_v54 = vpop.eup %4035 }
 0x256   :  { %v1487_v56 = vpop.f32.mrb[94].mxu1  ;;  %v2160_v9 = vpop.f32.mrb[94].mxu0  ;;  %v3259_v21 = vmul.f32 %v4036_v54, %v4960_v4  ;;  %v2370_v61 = vadd.f32 %v2157_v22, %v1485_v53 }
 0x257   :  { %v4038_v3 = vpop.eup %4037  ;;  %3323 = vst.msk [vmem:[%s5502_s3 + $0x30] sm:$0xff] %vm3316_vm4, %v3258_v33  ;;  %4047 = vpow2.f32 %v3623_v58  ;;  %v1488_v1 = vadd.f32 %v1487_v56, %v4863_v26  ;;  %v1489_v38 = vpop.f32.mrb[95].mxu1 }
 0x258   :  { %v2162_v7 = vpop.f32.mrb[95].mxu0  ;;  %v2557_v18 = vpop.permute.xlu1 %2556  ;;  %v3070_v46 = vadd.f32 1.0, %v4038_v3  ;;  %3324 = vst.msk [vmem:[%s5502_s3 + $0x38] sm:$0xff] %vm3316_vm4, %v3259_v21 }
 0x259   :  { %v4040_v44 = vpop.eup %4039  ;;  %v5029_v15 = vadd.f32 %v2557_v18, %v2370_v61  ;;  %v2371_v19 = vadd.f32 %v2160_v9, %v1488_v1  ;;  %v2562_v12 = vpop.permute.xlu0 %2561 }
 0x25a   :  { %4049 = vrcp.f32 %v3070_v46  ;;  %v3071_v4 = vadd.f32 1.0, %v4040_v44 }
 0x25b   :  { %v3624_v13 = vmul.f32 -1.442695, %v5029_v15  ;;  %v5032_v63 = vadd.f32 %v2562_v12, %v2371_v19  ;;  %v1492_v51 = vpop.f32.mrb[96].mxu1  ;;  %v2165_v47 = vpop.f32.mrb[96].mxu0 }
 0x25c   :  { %v4042_v26 = vpop.eup %4041  ;;  %4051 = vrcp.f32 %v3071_v4  ;;  %v1493_v48 = vadd.f32 %v1492_v51, %v4867_v37  ;;  %v1494_v31 = vpop.f32.mrb[97].mxu1 }
 0x25d   :  { %v3260_v30 = vmul.f32 %v4042_v26, %v4975_v52  ;;  %4053 = vpow2.f32 %v3624_v13  ;;  %v3625_v0 = vmul.f32 -1.442695, %v5032_v63  ;;  %v2167_v8 = vpop.f32.mrb[97].mxu0  ;;  %v1495_v22 = vpop.f32.mrb[98].mxu1 }
 0x25e   :  { %v4044_v10 = vpop.eup %4043  ;;  %v2168_v33 = vpop.f32.mrb[98].mxu0  ;;  %v2372_v52 = vadd.f32 %v2165_v47, %v1493_v48  ;;  %v1496_v16 = vadd.f32 %v1495_v22, %v4871_v45 }
 0x25f   :  { %v4046_v58 = vpop.eup %4045  ;;  %3325 = vst.msk [vmem:[%s5502_s3 + $0x40] sm:$0xff] %vm3316_vm4, %v3260_v30  ;;  %v3261_v53 = vmul.f32 %v4044_v10, %v4978_v28  ;;  %4055 = vpow2.f32 %v3625_v0  ;;  %v1497_v41 = vpop.f32.mrb[99].mxu1 }
 0x260   :  { %v2170_v54 = vpop.f32.mrb[99].mxu0  ;;  %v2567_v37 = vpop.permute.xlu1 %2566  ;;  %v3072_v56 = vadd.f32 1.0, %v4046_v58  ;;  %v2373_v21 = vadd.f32 %v2168_v33, %v1496_v16 }
 0x261   :  { %v4048_v9 = vpop.eup %4047  ;;  %3326 = vst.msk [vmem:[%s5502_s3 + $0x48] sm:$0xff] %vm3316_vm4, %v3261_v53  ;;  %v5047_v3 = vadd.f32 %v2567_v37, %v2372_v52  ;;  %v2572_v61 = vpop.permute.xlu0 %2571 }
 0x262   :  { %4057 = vrcp.f32 %v3072_v56  ;;  %v3073_v28 = vadd.f32 1.0, %v4048_v9  ;;  %v5050_v38 = vadd.f32 %v2572_v61, %v2373_v21 }
 0x263   :  { %v3626_v1 = vmul.f32 -1.442695, %v5047_v3  ;;  %v1500_v7 = vpop.f32.mrb[100].mxu1  ;;  %v2173_v18 = vpop.f32.mrb[100].mxu0 }
 0x264   :  { %v4050_v45 = vpop.eup %4049  ;;  %4059 = vrcp.f32 %v3073_v28  ;;  %v3627_v44 = vmul.f32 -1.442695, %v5050_v38  ;;  %v1501_v19 = vadd.f32 %v1500_v7, %v4875_v57  ;;  %v1502_v12 = vpop.f32.mrb[101].mxu1 }
 0x265   :  { %v3262_v46 = vmul.f32 %v4050_v45, %v4993_v14  ;;  %4061 = vpow2.f32 %v3626_v1  ;;  %v2175_v4 = vpop.f32.mrb[101].mxu0  ;;  %v1503_v26 = vpop.f32.mrb[102].mxu1 }
 0x266   :  { %v4052_v13 = vpop.eup %4051  ;;  %v2176_v51 = vpop.f32.mrb[102].mxu0  ;;  %4063 = vpow2.f32 %v3627_v44  ;;  %v2374_v14 = vadd.f32 %v2173_v18, %v1501_v19  ;;  %v1504_v0 = vadd.f32 %v1503_v26, %v4879_v6 }
 0x267   :  { %v4054_v47 = vpop.eup %4053  ;;  %3327 = vst.msk [vmem:[%s5502_s3 + $0x50] sm:$0xff] %vm3316_vm4, %v3262_v46  ;;  %v3263_v30 = vmul.f32 %v4052_v13, %v4996_v27  ;;  %v1505_v48 = vpop.f32.mrb[103].mxu1 }
 0x268   :  { %v2178_v31 = vpop.f32.mrb[103].mxu0  ;;  %v2577_v57 = vpop.permute.xlu1 %2576  ;;  %v3074_v8 = vadd.f32 1.0, %v4054_v47  ;;  %v2375_v33 = vadd.f32 %v2176_v51, %v1504_v0 }
 0x269   :  { %v4056_v10 = vpop.eup %4055  ;;  %3328 = vst.msk [vmem:[%s5502_s3 + $0x58] sm:$0xff] %vm3316_vm4, %v3263_v30  ;;  %v5065_v22 = vadd.f32 %v2577_v57, %v2374_v14  ;;  %v2582_v58 = vpop.permute.xlu0 %2581 }
 0x26a   :  { %4065 = vrcp.f32 %v3074_v8  ;;  %v3075_v27 = vadd.f32 1.0, %v4056_v10  ;;  %v5068_v52 = vadd.f32 %v2582_v58, %v2375_v33 }
 0x26b   :  { %v3628_v53 = vmul.f32 -1.442695, %v5065_v22  ;;  %v1508_v16 = vpop.f32.mrb[104].mxu1  ;;  %v2181_v41 = vpop.f32.mrb[104].mxu0 }
 0x26c   :  { %v4058_v6 = vpop.eup %4057  ;;  %4067 = vrcp.f32 %v3075_v27  ;;  %v3629_v37 = vmul.f32 -1.442695, %v5068_v52  ;;  %v1509_v56 = vadd.f32 %v1508_v16, %v4883_v20  ;;  %v1510_v9 = vpop.f32.mrb[105].mxu1 }
 0x26d   :  { %v3264_v54 = vmul.f32 %v4058_v6, %v5011_v42  ;;  %4069 = vpow2.f32 %v3628_v53  ;;  %v2183_v21 = vpop.f32.mrb[105].mxu0  ;;  %v1511_v28 = vpop.f32.mrb[106].mxu1 }
 0x26e   :  { %v4060_v61 = vpop.eup %4059  ;;  %v2184_v1 = vpop.f32.mrb[106].mxu0  ;;  %4071 = vpow2.f32 %v3629_v37  ;;  %v2376_v42 = vadd.f32 %v2181_v41, %v1509_v56  ;;  %v1512_v18 = vadd.f32 %v1511_v28, %v4887_v32 }
 0x26f   :  { %v4062_v45 = vpop.eup %4061  ;;  %3329 = vst.msk [vmem:[%s5502_s3 + $0x60] sm:$0xff] %vm3316_vm4, %v3264_v54  ;;  %v3265_v7 = vmul.f32 %v4060_v61, %v5014_v35  ;;  %v1513_v46 = vpop.f32.mrb[107].mxu1 }
 0x270   :  { %v2186_v44 = vpop.f32.mrb[107].mxu0  ;;  %v2587_v20 = vpop.permute.xlu1 %2586  ;;  %v3076_v19 = vadd.f32 1.0, %v4062_v45  ;;  %v2377_v13 = vadd.f32 %v2184_v1, %v1512_v18 }
 0x271   :  { %v4064_v12 = vpop.eup %4063  ;;  %3330 = vst.msk [vmem:[%s5502_s3 + $0x68] sm:$0xff] %vm3316_vm4, %v3265_v7  ;;  %v5083_v4 = vadd.f32 %v2587_v20, %v2376_v42  ;;  %v2592_v26 = vpop.permute.xlu0 %2591 }
 0x272   :  { %4073 = vrcp.f32 %v3076_v19  ;;  %v3077_v35 = vadd.f32 1.0, %v4064_v12  ;;  %v5086_v47 = vadd.f32 %v2592_v26, %v2377_v13 }
 0x273   :  { %v3630_v51 = vmul.f32 -1.442695, %v5083_v4  ;;  %v1516_v30 = vpop.f32.mrb[108].mxu1  ;;  %v2189_v14 = vpop.f32.mrb[108].mxu0 }
 0x274   :  { %v4066_v32 = vpop.eup %4065  ;;  %4075 = vrcp.f32 %v3077_v35  ;;  %v3631_v48 = vmul.f32 -1.442695, %v5086_v47  ;;  %v1517_v31 = vadd.f32 %v1516_v30, %v4891_v34  ;;  %v1518_v57 = vpop.f32.mrb[109].mxu1 }
 0x275   :  { %v3266_v0 = vmul.f32 %v4066_v32, %v5029_v15  ;;  %4077 = vpow2.f32 %v3630_v51  ;;  %v2191_v8 = vpop.f32.mrb[109].mxu0  ;;  %v1519_v33 = vpop.f32.mrb[110].mxu1 }
 0x276   :  { %v4068_v10 = vpop.eup %4067  ;;  %v2192_v58 = vpop.f32.mrb[110].mxu0  ;;  %4079 = vpow2.f32 %v3631_v48  ;;  %v2378_v15 = vadd.f32 %v2189_v14, %v1517_v31  ;;  %v1520_v6 = vadd.f32 %v1519_v33, %v4895_v2 }
 0x277   :  { %v4070_v27 = vpop.eup %4069  ;;  %3331 = vst.msk [vmem:[%s5502_s3 + $0x70] sm:$0xff] %vm3316_vm4, %v3266_v0  ;;  %v3267_v53 = vmul.f32 %v4068_v10, %v5032_v63  ;;  %v1521_v16 = vpop.f32.mrb[111].mxu1 }
 0x278   :  { %v2194_v41 = vpop.f32.mrb[111].mxu0  ;;  %v2597_v34 = vpop.permute.xlu1 %2596  ;;  %v3078_v54 = vadd.f32 1.0, %v4070_v27  ;;  %v2379_v9 = vadd.f32 %v2192_v58, %v1520_v6 }
 0x279   :  { %v4072_v37 = vpop.eup %4071  ;;  %3332 = vst.msk [vmem:[%s5502_s3 + $0x78] sm:$0xff] %vm3316_vm4, %v3267_v53  ;;  %v5101_v56 = vadd.f32 %v2597_v34, %v2378_v15  ;;  %v2602_v21 = vpop.permute.xlu0 %2601 }
 0x27a   :  { %4081 = vrcp.f32 %v3078_v54  ;;  %v3079_v63 = vadd.f32 1.0, %v4072_v37  ;;  %v5104_v28 = vadd.f32 %v2602_v21, %v2379_v9 }
 0x27b   :  { %v3632_v61 = vmul.f32 -1.442695, %v5101_v56  ;;  %v1524_v1 = vpop.f32.mrb[112].mxu1  ;;  %v2197_v45 = vpop.f32.mrb[112].mxu0 }
 0x27c   :  { %v4074_v2 = vpop.eup %4073  ;;  %4083 = vrcp.f32 %v3079_v63  ;;  %v3633_v42 = vmul.f32 -1.442695, %v5104_v28  ;;  %v1525_v18 = vadd.f32 %v1524_v1, %v4899_v24  ;;  %v1526_v46 = vpop.f32.mrb[113].mxu1 }
 0x27d   :  { %v3268_v7 = vmul.f32 %v4074_v2, %v5047_v3  ;;  %4085 = vpow2.f32 %v3632_v61  ;;  %v2199_v44 = vpop.f32.mrb[113].mxu0  ;;  %v1527_v19 = vpop.f32.mrb[114].mxu1 }
 0x27e   :  { %v4076_v20 = vpop.eup %4075  ;;  %v2200_v12 = vpop.f32.mrb[114].mxu0  ;;  %4087 = vpow2.f32 %v3633_v42  ;;  %v2380_v3 = vadd.f32 %v2197_v45, %v1525_v18  ;;  %v1528_v35 = vadd.f32 %v1527_v19, %v4903_v43 }
 0x27f   :  { %v4078_v13 = vpop.eup %4077  ;;  %3333 = vst.msk [vmem:[%s5502_s3 + $0x80] sm:$0xff] %vm3316_vm4, %v3268_v7  ;;  %v3269_v26 = vmul.f32 %v4076_v20, %v5050_v38  ;;  %v1529_v51 = vpop.f32.mrb[115].mxu1 }
 0x280   :  { %v2202_v32 = vpop.f32.mrb[115].mxu0  ;;  %v2607_v24 = vpop.permute.xlu1 %2606  ;;  %v3080_v30 = vadd.f32 1.0, %v4078_v13  ;;  %v2381_v48 = vadd.f32 %v2200_v12, %v1528_v35 }
 0x281   :  { %v4080_v14 = vpop.eup %4079  ;;  %3334 = vst.msk [vmem:[%s5502_s3 + $0x88] sm:$0xff] %vm3316_vm4, %v3269_v26  ;;  %v5119_v0 = vadd.f32 %v2607_v24, %v2380_v3  ;;  %v2612_v31 = vpop.permute.xlu0 %2611 }
 0x282   :  { %4089 = vrcp.f32 %v3080_v30  ;;  %v3081_v38 = vadd.f32 1.0, %v4080_v14  ;;  %v5122_v8 = vadd.f32 %v2612_v31, %v2381_v48 }
 0x283   :  { %v3634_v57 = vmul.f32 -1.442695, %v5119_v0  ;;  %v1532_v10 = vpop.f32.mrb[116].mxu1  ;;  %v2205_v33 = vpop.f32.mrb[116].mxu0 }
 0x284   :  { %v4082_v43 = vpop.eup %4081  ;;  %4091 = vrcp.f32 %v3081_v38  ;;  %v3635_v27 = vmul.f32 -1.442695, %v5122_v8  ;;  %v1533_v53 = vadd.f32 %v1532_v10, %v4907_v59  ;;  %v1534_v15 = vpop.f32.mrb[117].mxu1 }
 0x285   :  { %v3270_v58 = vmul.f32 %v4082_v43, %v5065_v22  ;;  %4093 = vpow2.f32 %v3634_v57  ;;  %v2207_v6 = vpop.f32.mrb[117].mxu0  ;;  %v1535_v41 = vpop.f32.mrb[118].mxu1 }
 0x286   :  { %v4084_v16 = vpop.eup %4083  ;;  %v2208_v34 = vpop.f32.mrb[118].mxu0  ;;  %4095 = vpow2.f32 %v3635_v27  ;;  %v2382_v22 = vadd.f32 %v2205_v33, %v1533_v53  ;;  %v1536_v9 = vadd.f32 %v1535_v41, %v4911_v25 }
 0x287   :  { %v4086_v54 = vpop.eup %4085  ;;  %3335 = vst.msk [vmem:[%s5502_s3 + $0x90] sm:$0xff] %vm3316_vm4, %v3270_v58  ;;  %v3271_v37 = vmul.f32 %v4084_v16, %v5068_v52  ;;  %v1537_v21 = vpop.f32.mrb[119].mxu1 }
 0x288   :  { %v2210_v63 = vpop.f32.mrb[119].mxu0  ;;  %v2617_v59 = vpop.permute.xlu1 %2616  ;;  %v3082_v61 = vadd.f32 1.0, %v4086_v54  ;;  %v2383_v45 = vadd.f32 %v2208_v34, %v1536_v9 }
 0x289   :  { %v4088_v2 = vpop.eup %4087  ;;  %3336 = vst.msk [vmem:[%s5502_s3 + $0x98] sm:$0xff] %vm3316_vm4, %v3271_v37  ;;  %v5137_v1 = vadd.f32 %v2617_v59, %v2382_v22  ;;  %v2622_v7 = vpop.permute.xlu0 %2621 }
 0x28a   :  { %4097 = vrcp.f32 %v3082_v61  ;;  %v3083_v52 = vadd.f32 1.0, %v4088_v2  ;;  %v5140_v18 = vadd.f32 %v2622_v7, %v2383_v45 }
 0x28b   :  { %v3636_v42 = vmul.f32 -1.442695, %v5137_v1  ;;  %v1540_v46 = vpop.f32.mrb[120].mxu1  ;;  %v2213_v44 = vpop.f32.mrb[120].mxu0 }
 0x28c   :  { %v4090_v25 = vpop.eup %4089  ;;  %4099 = vrcp.f32 %v3083_v52  ;;  %v3637_v19 = vmul.f32 -1.442695, %v5140_v18  ;;  %v1541_v12 = vadd.f32 %v1540_v46, %v4915_v39  ;;  %v1542_v13 = vpop.f32.mrb[121].mxu1 }
 0x28d   :  { %v3272_v20 = vmul.f32 %v4090_v25, %v5083_v4  ;;  %4101 = vpow2.f32 %v3636_v42  ;;  %v2215_v26 = vpop.f32.mrb[121].mxu0  ;;  %v1543_v35 = vpop.f32.mrb[122].mxu1 }
 0x28e   :  { %v4092_v3 = vpop.eup %4091  ;;  %v2216_v51 = vpop.f32.mrb[122].mxu0  ;;  %4103 = vpow2.f32 %v3637_v19  ;;  %v2384_v4 = vadd.f32 %v2213_v44, %v1541_v12  ;;  %v1544_v30 = vadd.f32 %v1543_v35, %v4919_v60 }
 0x28f   :  { %v4094_v32 = vpop.eup %4093  ;;  %3337 = vst.msk [vmem:[%s5502_s3 + $0xa0] sm:$0xff] %vm3316_vm4, %v3272_v20  ;;  %v3273_v24 = vmul.f32 %v4092_v3, %v5086_v47  ;;  %v1545_v14 = vpop.f32.mrb[123].mxu1 }
 0x290   :  { %v2218_v48 = vpop.f32.mrb[123].mxu0  ;;  %v2627_v39 = vpop.permute.xlu1 %2626  ;;  %v3084_v31 = vadd.f32 1.0, %v4094_v32  ;;  %v2385_v43 = vadd.f32 %v2216_v51, %v1544_v30 }
 0x291   :  { %v4096_v38 = vpop.eup %4095  ;;  %3338 = vst.msk [vmem:[%s5502_s3 + $0xa8] sm:$0xff] %vm3316_vm4, %v3273_v24  ;;  %v5155_v57 = vadd.f32 %v2627_v39, %v2384_v4  ;;  %v2632_v10 = vpop.permute.xlu0 %2631 }
 0x292   :  { %4105 = vrcp.f32 %v3084_v31  ;;  %v3085_v47 = vadd.f32 1.0, %v4096_v38  ;;  %v5158_v58 = vadd.f32 %v2632_v10, %v2385_v43 }
 0x293   :  { %v3638_v33 = vmul.f32 -1.442695, %v5155_v57  ;;  %v1548_v27 = vpop.f32.mrb[124].mxu1  ;;  %v2221_v53 = vpop.f32.mrb[124].mxu0 }
 0x294   :  { %v4098_v60 = vpop.eup %4097  ;;  %4107 = vrcp.f32 %v3085_v47  ;;  %v3639_v6 = vmul.f32 -1.442695, %v5158_v58  ;;  %v1549_v16 = vadd.f32 %v1548_v27, %v4923_v50  ;;  %v1550_v41 = vpop.f32.mrb[125].mxu1 }
 0x295   :  { %v3274_v15 = vmul.f32 %v4098_v60, %v5101_v56  ;;  %4109 = vpow2.f32 %v3638_v33  ;;  %v2223_v34 = vpop.f32.mrb[125].mxu0  ;;  %v1551_v37 = vpop.f32.mrb[126].mxu1 }
 0x296   :  { %v4100_v54 = vpop.eup %4099  ;;  %v2224_v22 = vpop.f32.mrb[126].mxu0  ;;  %4111 = vpow2.f32 %v3639_v6  ;;  %v2386_v56 = vadd.f32 %v2221_v53, %v1549_v16  ;;  %v1552_v63 = vadd.f32 %v1551_v37, %v4927_v40 }
 0x297   :  { %v4102_v9 = vpop.eup %4101  ;;  %3339 = vst.msk [vmem:[%s5502_s3 + $0xb0] sm:$0xff] %vm3316_vm4, %v3274_v15  ;;  %v3275_v21 = vmul.f32 %v4100_v54, %v5104_v28  ;;  %v1553_v59 = vpop.f32.mrb[127].mxu1 }
 0x298   :  { %v2226_v61 = vpop.f32.mrb[127].mxu0  ;;  %v2637_v50 = vpop.permute.xlu1 %2636  ;;  %v3086_v2 = vadd.f32 1.0, %v4102_v9  ;;  %v2387_v52 = vadd.f32 %v2224_v22, %v1552_v63 }
 0x299   :  { %v4104_v45 = vpop.eup %4103  ;;  %3340 = vst.msk [vmem:[%s5502_s3 + $0xb8] sm:$0xff] %vm3316_vm4, %v3275_v21  ;;  %v5173_v7 = vadd.f32 %v2637_v50, %v2386_v56  ;;  %v2642_v42 = vpop.permute.xlu0 %2641 }
 0x29a   :  { %4113 = vrcp.f32 %v3086_v2  ;;  %v3087_v28 = vadd.f32 1.0, %v4104_v45  ;;  %v5176_v46 = vadd.f32 %v2642_v42, %v2387_v52 }
 0x29b   :  { %v3640_v25 = vmul.f32 -1.442695, %v5173_v7  ;;  %v1556_v44 = vpop.f32.mrb[128].mxu1  ;;  %v2229_v20 = vpop.f32.mrb[128].mxu0 }
 0x29c   :  { %v4106_v40 = vpop.eup %4105  ;;  %4115 = vrcp.f32 %v3087_v28  ;;  %v3641_v12 = vmul.f32 -1.442695, %v5176_v46  ;;  %v1557_v13 = vadd.f32 %v1556_v44, %v4799_v49  ;;  %v1558_v26 = vpop.f32.mrb[129].mxu1 }
 0x29d   :  { %v3276_v19 = vmul.f32 %v4106_v40, %v5119_v0  ;;  %4117 = vpow2.f32 %v3640_v25  ;;  %v2231_v3 = vpop.f32.mrb[129].mxu0  ;;  %v1559_v51 = vpop.f32.mrb[130].mxu1 }
 0x29e   :  { %v4108_v35 = vpop.eup %4107  ;;  %v2232_v32 = vpop.f32.mrb[130].mxu0  ;;  %4119 = vpow2.f32 %v3641_v12  ;;  %v2388_v0 = vadd.f32 %v2229_v20, %v1557_v13  ;;  %v1560_v30 = vadd.f32 %v1559_v51, %v4803_v55 }
 0x29f   :  { %v4110_v24 = vpop.eup %4109  ;;  %3341 = vst.msk [vmem:[%s5502_s3 + $0xc0] sm:$0xff] %vm3316_vm4, %v3276_v19  ;;  %v3277_v4 = vmul.f32 %v4108_v35, %v5122_v8  ;;  %v1561_v14 = vpop.f32.mrb[131].mxu1 }
 0x2a0   :  { %v2234_v48 = vpop.f32.mrb[131].mxu0  ;;  %v2647_v49 = vpop.permute.xlu1 %2646  ;;  %v3088_v39 = vadd.f32 1.0, %v4110_v24  ;;  %v2389_v43 = vadd.f32 %v2232_v32, %v1560_v30 }
 0x2a1   :  { %v4112_v31 = vpop.eup %4111  ;;  %3342 = vst.msk [vmem:[%s5502_s3 + $0xc8] sm:$0xff] %vm3316_vm4, %v3277_v4  ;;  %v5191_v38 = vadd.f32 %v2647_v49, %v2388_v0  ;;  %v2652_v10 = vpop.permute.xlu0 %2651 }
 0x2a2   :  { %4121 = vrcp.f32 %v3088_v39  ;;  %v3089_v8 = vadd.f32 1.0, %v4112_v31  ;;  %v5194_v33 = vadd.f32 %v2652_v10, %v2389_v43 }
 0x2a3   :  { %v3642_v47 = vmul.f32 -1.442695, %v5191_v38  ;;  %v1564_v60 = vpop.f32.mrb[132].mxu1  ;;  %v2237_v27 = vpop.f32.mrb[132].mxu0 }
 0x2a4   :  { %v4114_v55 = vpop.eup %4113  ;;  %4123 = vrcp.f32 %v3089_v8  ;;  %v3643_v15 = vmul.f32 -1.442695, %v5194_v33  ;;  %v1565_v6 = vadd.f32 %v1564_v60, %v4813_v62  ;;  %v1566_v16 = vpop.f32.mrb[133].mxu1 }
 0x2a5   :  { %v3278_v53 = vmul.f32 %v4114_v55, %v5137_v1  ;;  %4125 = vpow2.f32 %v3642_v47  ;;  %v2239_v41 = vpop.f32.mrb[133].mxu0  ;;  %v1567_v54 = vpop.f32.mrb[134].mxu1 }
 0x2a6   :  { %v4116_v34 = vpop.eup %4115  ;;  %v2240_v37 = vpop.f32.mrb[134].mxu0  ;;  %4127 = vpow2.f32 %v3643_v15  ;;  %v2390_v1 = vadd.f32 %v2237_v27, %v1565_v6  ;;  %v1568_v21 = vadd.f32 %v1567_v54, %v4817_v5 }
 0x2a7   :  { %v4118_v22 = vpop.eup %4117  ;;  %3343 = vst.msk [vmem:[%s5502_s3 + $0xd0] sm:$0xff] %vm3316_vm4, %v3278_v53  ;;  %v3279_v9 = vmul.f32 %v4116_v34, %v5140_v18  ;;  %v1569_v56 = vpop.f32.mrb[135].mxu1 }
 0x2a8   :  { %v2242_v63 = vpop.f32.mrb[135].mxu0  ;;  %v2657_v62 = vpop.permute.xlu1 %2656  ;;  %v3090_v59 = vadd.f32 1.0, %v4118_v22  ;;  %v2391_v2 = vadd.f32 %v2240_v37, %v1568_v21 }
 0x2a9   :  { %v4120_v61 = vpop.eup %4119  ;;  %3344 = vst.msk [vmem:[%s5502_s3 + $0xd8] sm:$0xff] %vm3316_vm4, %v3279_v9  ;;  %v5209_v50 = vadd.f32 %v2657_v62, %v2390_v1  ;;  %v2662_v45 = vpop.permute.xlu0 %2661 }
 0x2aa   :  { %4129 = vrcp.f32 %v3090_v59  ;;  %v3091_v18 = vadd.f32 1.0, %v4120_v61  ;;  %v5212_v42 = vadd.f32 %v2662_v45, %v2391_v2 }
 0x2ab   :  { %v3644_v52 = vmul.f32 -1.442695, %v5209_v50  ;;  %v1572_v28 = vpop.f32.mrb[136].mxu1  ;;  %v2245_v25 = vpop.f32.mrb[136].mxu0 }
 0x2ac   :  { %v4122_v5 = vpop.eup %4121  ;;  %4131 = vrcp.f32 %v3091_v18  ;;  %v3645_v44 = vmul.f32 -1.442695, %v5212_v42  ;;  %v1573_v20 = vadd.f32 %v1572_v28, %v4821_v11  ;;  %v1574_v19 = vpop.f32.mrb[137].mxu1 }
 0x2ad   :  { %v3280_v40 = vmul.f32 %v4122_v5, %v5155_v57  ;;  %4133 = vpow2.f32 %v3644_v52  ;;  %v2247_v12 = vpop.f32.mrb[137].mxu0  ;;  %v1575_v26 = vpop.f32.mrb[138].mxu1  ;;  %v5528_v19 = vld [vmem:[#allocation5_spill] sm:$0xff] }
 0x2ae   :  { %v4124_v13 = vpop.eup %4123  ;;  %v2248_v3 = vpop.f32.mrb[138].mxu0  ;;  %4135 = vpow2.f32 %v3645_v44  ;;  %v2392_v57 = vadd.f32 %v2245_v25, %v1573_v20  ;;  %v1576_v32 = vadd.f32 %v1575_v26, %v4825_v17 }
 0x2af   :  { %v4126_v35 = vpop.eup %4125  ;;  %3345 = vst.msk [vmem:[%s5502_s3 + $0xe0] sm:$0xff] %vm3316_vm4, %v3280_v40  ;;  %v3281_v51 = vmul.f32 %v4124_v13, %v5158_v58  ;;  %v1577_v24 = vpop.f32.mrb[139].mxu1 }
 0x2b0   :  { %v2250_v4 = vpop.f32.mrb[139].mxu0  ;;  %v2667_v11 = vpop.permute.xlu1 %2666  ;;  %v3092_v0 = vadd.f32 1.0, %v4126_v35  ;;  %v2393_v48 = vadd.f32 %v2248_v3, %v1576_v32 }
 0x2b1   :  { %v4128_v30 = vpop.eup %4127  ;;  %3346 = vst.msk [vmem:[%s5502_s3 + $0xe8] sm:$0xff] %vm3316_vm4, %v3281_v51  ;;  %v5227_v14 = vadd.f32 %v2667_v11, %v2392_v57  ;;  %v2672_v49 = vpop.permute.xlu0 %2671 }
 0x2b2   :  { %4137 = vrcp.f32 %v3092_v0  ;;  %v3093_v58 = vadd.f32 1.0, %v4128_v30  ;;  %v5230_v31 = vadd.f32 %v2672_v49, %v2393_v48 }
 0x2b3   :  { %v3646_v39 = vmul.f32 -1.442695, %v5227_v14  ;;  %v1580_v43 = vpop.f32.mrb[140].mxu1  ;;  %v2253_v10 = vpop.f32.mrb[140].mxu0 }
 0x2b4   :  { %v4130_v17 = vpop.eup %4129  ;;  %4139 = vrcp.f32 %v3093_v58  ;;  %v3647_v47 = vmul.f32 -1.442695, %v5230_v31  ;;  %v1581_v55 = vadd.f32 %v1580_v43, %v4829_v23  ;;  %v1582_v60 = vpop.f32.mrb[141].mxu1  ;;  %v5529_v58 = vld [vmem:[#allocation6_spill] sm:$0xff] }
 0x2b5   :  { %v3282_v8 = vmul.f32 %v4130_v17, %v5173_v7  ;;  %4141 = vpow2.f32 %v3646_v39  ;;  %v2255_v27 = vpop.f32.mrb[141].mxu0  ;;  %v1583_v15 = vpop.f32.mrb[142].mxu1 }
 0x2b6   :  { %v4132_v53 = vpop.eup %4131  ;;  %v2256_v6 = vpop.f32.mrb[142].mxu0  ;;  %4143 = vpow2.f32 %v3647_v47  ;;  %v2394_v7 = vadd.f32 %v2253_v10, %v1581_v55  ;;  %v1584_v34 = vadd.f32 %v1583_v15, %v4833_v29  ;;  %v5530_v27 = vld [vmem:[#allocation7_spill] sm:$0xff] }
 0x2b7   :  { %v4134_v16 = vpop.eup %4133  ;;  %3347 = vst.msk [vmem:[%s5502_s3 + $0xf0] sm:$0xff] %vm3316_vm4, %v3282_v8  ;;  %v3283_v41 = vmul.f32 %v4132_v53, %v5176_v46  ;;  %v1585_v54 = vpop.f32.mrb[143].mxu1 }
 0x2b8   :  { %v2258_v37 = vpop.f32.mrb[143].mxu0  ;;  %v2677_v23 = vpop.permute.xlu1 %2676  ;;  %v3094_v22 = vadd.f32 1.0, %v4134_v16  ;;  %v2395_v21 = vadd.f32 %v2256_v6, %v1584_v34 }
 0x2b9   :  { %v4136_v9 = vpop.eup %4135  ;;  %3348 = vst.msk [vmem:[%s5502_s3 + $0xf8] sm:$0xff] %vm3316_vm4, %v3283_v41  ;;  %v5245_v1 = vadd.f32 %v2677_v23, %v2394_v7  ;;  %v2682_v56 = vpop.permute.xlu0 %2681 }
 0x2ba   :  { %4145 = vrcp.f32 %v3094_v22  ;;  %v3095_v46 = vadd.f32 1.0, %v4136_v9  ;;  %v5248_v62 = vadd.f32 %v2682_v56, %v2395_v21 }
 0x2bb   :  { %v3648_v63 = vmul.f32 -1.442695, %v5245_v1  ;;  %v1588_v59 = vpop.f32.mrb[144].mxu1  ;;  %v2261_v61 = vpop.f32.mrb[144].mxu0 }
 0x2bc   :  { %v4138_v29 = vpop.eup %4137  ;;  %4147 = vrcp.f32 %v3095_v46  ;;  %v3649_v45 = vmul.f32 -1.442695, %v5248_v62  ;;  %v1589_v18 = vadd.f32 %v1588_v59, %v4837_v36  ;;  %v1590_v52 = vpop.f32.mrb[145].mxu1 }
 0x2bd   :  { %v3284_v2 = vmul.f32 %v4138_v29, %v5191_v38  ;;  %4149 = vpow2.f32 %v3648_v63  ;;  %v2263_v5 = vpop.f32.mrb[145].mxu0  ;;  %v1591_v25 = vpop.f32.mrb[146].mxu1  ;;  %v5531_v29 = vld [vmem:[#allocation8_spill] sm:$0xff] }
 0x2be   :  { %v4140_v28 = vpop.eup %4139  ;;  %v2264_v40 = vpop.f32.mrb[146].mxu0  ;;  %4151 = vpow2.f32 %v3649_v45  ;;  %v2396_v38 = vadd.f32 %v2261_v61, %v1589_v18  ;;  %v1592_v12 = vadd.f32 %v1591_v25, %v5528_v19  ;;  %v5532_v25 = vld [vmem:[#allocation9_spill] sm:$0xff] }
 0x2bf   :  { %v4142_v44 = vpop.eup %4141  ;;  %3349 = vst.msk [vmem:[%s5502_s3 + $0x100] sm:$0xff] %vm3316_vm4, %v3284_v2  ;;  %v3285_v20 = vmul.f32 %v4140_v28, %v5194_v33  ;;  %v1593_v13 = vpop.f32.mrb[147].mxu1 }
 0x2c0   :  { %v2266_v26 = vpop.f32.mrb[147].mxu0  ;;  %v2687_v36 = vpop.permute.xlu1 %2686  ;;  %v3096_v3 = vadd.f32 1.0, %v4142_v44  ;;  %v2397_v57 = vadd.f32 %v2264_v40, %v1592_v12 }
 0x2c1   :  { %v4144_v35 = vpop.eup %4143  ;;  %3350 = vst.msk [vmem:[%s5502_s3 + $0x108] sm:$0xff] %vm3316_vm4, %v3285_v20  ;;  %v5263_v51 = vadd.f32 %v2687_v36, %v2396_v38  ;;  %v2692_v32 = vpop.permute.xlu0 %2691 }
 0x2c2   :  { %4153 = vrcp.f32 %v3096_v3  ;;  %v3097_v33 = vadd.f32 1.0, %v4144_v35  ;;  %v5266_v4 = vadd.f32 %v2692_v32, %v2397_v57 }
 0x2c3   :  { %v3650_v24 = vmul.f32 -1.442695, %v5263_v51  ;;  %v1596_v0 = vpop.f32.mrb[148].mxu1  ;;  %v2269_v30 = vpop.f32.mrb[148].mxu0 }
 0x2c4   :  { %v4146_v11 = vpop.eup %4145  ;;  %4155 = vrcp.f32 %v3097_v33  ;;  %v3651_v49 = vmul.f32 -1.442695, %v5266_v4  ;;  %v1597_v39 = vadd.f32 %v1596_v0, %v5529_v58  ;;  %v1598_v17 = vpop.f32.mrb[149].mxu1  ;;  %v5533_v0 = vld [vmem:[#allocation10_spill] sm:$0xff] }
 0x2c5   :  { %v3286_v48 = vmul.f32 %v4146_v11, %v5209_v50  ;;  %4157 = vpow2.f32 %v3650_v24  ;;  %v2271_v43 = vpop.f32.mrb[149].mxu0  ;;  %v1599_v8 = vpop.f32.mrb[150].mxu1 }
 0x2c6   :  { %v4148_v10 = vpop.eup %4147  ;;  %v2272_v47 = vpop.f32.mrb[150].mxu0  ;;  %4159 = vpow2.f32 %v3651_v49  ;;  %v2398_v50 = vadd.f32 %v2269_v30, %v1597_v39  ;;  %v1600_v53 = vadd.f32 %v1599_v8, %v5530_v27  ;;  %v5534_v8 = vld [vmem:[#allocation11_spill] sm:$0xff] }
 0x2c7   :  { %v4150_v55 = vpop.eup %4149  ;;  %3351 = vst.msk [vmem:[%s5502_s3 + $0x110] sm:$0xff] %vm3316_vm4, %v3286_v48  ;;  %v3287_v60 = vmul.f32 %v4148_v10, %v5212_v42  ;;  %v1601_v15 = vpop.f32.mrb[151].mxu1 }
 0x2c8   :  { %v2274_v6 = vpop.f32.mrb[151].mxu0  ;;  %v2697_v16 = vpop.permute.xlu1 %2696  ;;  %v3098_v41 = vadd.f32 1.0, %v4150_v55  ;;  %v2399_v54 = vadd.f32 %v2272_v47, %v1600_v53 }
 0x2c9   :  { %v4152_v7 = vpop.eup %4151  ;;  %3352 = vst.msk [vmem:[%s5502_s3 + $0x118] sm:$0xff] %vm3316_vm4, %v3287_v60  ;;  %v5281_v34 = vadd.f32 %v2697_v16, %v2398_v50  ;;  %v2702_v37 = vpop.permute.xlu0 %2701 }
 0x2ca   :  { %4161 = vrcp.f32 %v3098_v41  ;;  %v3099_v42 = vadd.f32 1.0, %v4152_v7  ;;  %v5284_v22 = vadd.f32 %v2702_v37, %v2399_v54 }
 0x2cb   :  { %v3652_v23 = vmul.f32 -1.442695, %v5281_v34  ;;  %v1604_v21 = vpop.f32.mrb[152].mxu1  ;;  %v2277_v56 = vpop.f32.mrb[152].mxu0 }
 0x2cc   :  { %v4154_v9 = vpop.eup %4153  ;;  %4163 = vrcp.f32 %v3099_v42  ;;  %v3653_v63 = vmul.f32 -1.442695, %v5284_v22  ;;  %v1605_v59 = vadd.f32 %v1604_v21, %v5531_v29  ;;  %v1606_v61 = vpop.f32.mrb[153].mxu1  ;;  %v5535_v21 = vld [vmem:[#allocation12_spill] sm:$0xff] }
 0x2cd   :  { %v3288_v46 = vmul.f32 %v4154_v9, %v5227_v14  ;;  %4165 = vpow2.f32 %v3652_v23  ;;  %v2279_v2 = vpop.f32.mrb[153].mxu0  ;;  %v1607_v18 = vpop.f32.mrb[154].mxu1 }
 0x2ce   :  { %v4156_v45 = vpop.eup %4155  ;;  %v2280_v52 = vpop.f32.mrb[154].mxu0  ;;  %4167 = vpow2.f32 %v3653_v63  ;;  %v2400_v14 = vadd.f32 %v2277_v56, %v1605_v59  ;;  %v1608_v40 = vadd.f32 %v1607_v18, %v5532_v25  ;;  %v5536_v18 = vld [vmem:[#allocation13_spill] sm:$0xff] }
 0x2cf   :  { %v4158_v5 = vpop.eup %4157  ;;  %3353 = vst.msk [vmem:[%s5502_s3 + $0x120] sm:$0xff] %vm3316_vm4, %v3288_v46  ;;  %v3289_v28 = vmul.f32 %v4156_v45, %v5230_v31  ;;  %v1609_v44 = vpop.f32.mrb[155].mxu1 }
 0x2d0   :  { %v2282_v20 = vpop.f32.mrb[155].mxu0  ;;  %v2707_v38 = vpop.permute.xlu1 %2706  ;;  %v3100_v19 = vadd.f32 1.0, %v4158_v5  ;;  %v2401_v26 = vadd.f32 %v2280_v52, %v1608_v40 }
 0x2d1   :  { %v4160_v12 = vpop.eup %4159  ;;  %3354 = vst.msk [vmem:[%s5502_s3 + $0x128] sm:$0xff] %vm3316_vm4, %v3289_v28  ;;  %v5299_v13 = vadd.f32 %v2707_v38, %v2400_v14  ;;  %v2712_v36 = vpop.permute.xlu0 %2711 }
 0x2d2   :  { %4169 = vrcp.f32 %v3100_v19  ;;  %v3101_v31 = vadd.f32 1.0, %v4160_v12  ;;  %v5302_v35 = vadd.f32 %v2712_v36, %v2401_v26 }
 0x2d3   :  { %v3654_v3 = vmul.f32 -1.442695, %v5299_v13  ;;  %v1612_v32 = vpop.f32.mrb[156].mxu1  ;;  %v2285_v33 = vpop.f32.mrb[156].mxu0 }
 0x2d4   :  { %v4162_v57 = vpop.eup %4161  ;;  %4171 = vrcp.f32 %v3101_v31  ;;  %v3655_v11 = vmul.f32 -1.442695, %v5302_v35  ;;  %v1613_v30 = vadd.f32 %v1612_v32, %v5533_v0  ;;  %v1614_v48 = vpop.f32.mrb[157].mxu1  ;;  %v5537_v32 = vld [vmem:[#allocation14_spill] sm:$0xff] }
 0x2d5   :  { %v3290_v24 = vmul.f32 %v4162_v57, %v5245_v1  ;;  %4173 = vpow2.f32 %v3654_v3  ;;  %v2287_v49 = vpop.f32.mrb[157].mxu0  ;;  %v1615_v39 = vpop.f32.mrb[158].mxu1 }
 0x2d6   :  { %v4164_v58 = vpop.eup %4163  ;;  %v2288_v17 = vpop.f32.mrb[158].mxu0  ;;  %4175 = vpow2.f32 %v3655_v11  ;;  %v2402_v1 = vadd.f32 %v2285_v33, %v1613_v30  ;;  %v1616_v47 = vadd.f32 %v1615_v39, %v5534_v8  ;;  %v5538_v39 = vld [vmem:[#allocation15_spill] sm:$0xff] }
 0x2d7   :  { %v4166_v43 = vpop.eup %4165  ;;  %3355 = vst.msk [vmem:[%s5502_s3 + $0x130] sm:$0xff] %vm3316_vm4, %v3290_v24  ;;  %v3291_v10 = vmul.f32 %v4164_v58, %v5248_v62  ;;  %v1617_v55 = vpop.f32.mrb[159].mxu1 }
 0x2d8   :  { %v2290_v60 = vpop.f32.mrb[159].mxu0  ;;  %v2717_v50 = vpop.permute.xlu1 %2716  ;;  %v3102_v27 = vadd.f32 1.0, %v4166_v43  ;;  %v2403_v6 = vadd.f32 %v2288_v17, %v1616_v47 }
 0x2d9   :  { %v4168_v53 = vpop.eup %4167  ;;  %3356 = vst.msk [vmem:[%s5502_s3 + $0x138] sm:$0xff] %vm3316_vm4, %v3291_v10  ;;  %v5317_v15 = vadd.f32 %v2717_v50, %v2402_v1  ;;  %v2722_v16 = vpop.permute.xlu0 %2721 }
 0x2da   :  { %4177 = vrcp.f32 %v3102_v27  ;;  %v3103_v62 = vadd.f32 1.0, %v4168_v53  ;;  %v5320_v7 = vadd.f32 %v2722_v16, %v2403_v6 }
 0x2db   :  { %v3656_v41 = vmul.f32 -1.442695, %v5317_v15  ;;  %v1620_v37 = vpop.f32.mrb[160].mxu1  ;;  %v2293_v42 = vpop.f32.mrb[160].mxu0 }
 0x2dc   :  { %v4170_v54 = vpop.eup %4169  ;;  %4179 = vrcp.f32 %v3103_v62  ;;  %v3657_v9 = vmul.f32 -1.442695, %v5320_v7  ;;  %v1621_v56 = vadd.f32 %v1620_v37, %v5535_v21  ;;  %v1622_v46 = vpop.f32.mrb[161].mxu1  ;;  %v5539_v37 = vld [vmem:[#allocation16_spill] sm:$0xff] }
 0x2dd   :  { %v3292_v23 = vmul.f32 %v4170_v54, %v5263_v51  ;;  %4181 = vpow2.f32 %v3656_v41  ;;  %v2295_v63 = vpop.f32.mrb[161].mxu0  ;;  %v1623_v59 = vpop.f32.mrb[162].mxu1 }
 0x2de   :  { %v4172_v29 = vpop.eup %4171  ;;  %v2296_v61 = vpop.f32.mrb[162].mxu0  ;;  %4183 = vpow2.f32 %v3657_v9  ;;  %v2404_v51 = vadd.f32 %v2293_v42, %v1621_v56  ;;  %v1624_v52 = vadd.f32 %v1623_v59, %v5536_v18  ;;  %v5540_v59 = vld [vmem:[#allocation17_spill] sm:$0xff] }
 0x2df   :  { %v4174_v2 = vpop.eup %4173  ;;  %3357 = vst.msk [vmem:[%s5502_s3 + $0x140] sm:$0xff] %vm3316_vm4, %v3292_v23  ;;  %v3293_v45 = vmul.f32 %v4172_v29, %v5266_v4  ;;  %v1625_v5 = vpop.f32.mrb[163].mxu1 }
 0x2e0   :  { %v2298_v28 = vpop.f32.mrb[163].mxu0  ;;  %v2727_v14 = vpop.permute.xlu1 %2726  ;;  %v3104_v25 = vadd.f32 1.0, %v4174_v2  ;;  %v2405_v20 = vadd.f32 %v2296_v61, %v1624_v52 }
 0x2e1   :  { %v4176_v40 = vpop.eup %4175  ;;  %3358 = vst.msk [vmem:[%s5502_s3 + $0x148] sm:$0xff] %vm3316_vm4, %v3293_v45  ;;  %v5335_v44 = vadd.f32 %v2727_v14, %v2404_v51  ;;  %v2732_v38 = vpop.permute.xlu0 %2731 }
 0x2e2   :  { %4185 = vrcp.f32 %v3104_v25  ;;  %v3105_v4 = vadd.f32 1.0, %v4176_v40  ;;  %v5338_v12 = vadd.f32 %v2732_v38, %v2405_v20 }
 0x2e3   :  { %v3658_v19 = vmul.f32 -1.442695, %v5335_v44  ;;  %v1628_v36 = vpop.f32.mrb[164].mxu1  ;;  %v2301_v31 = vpop.f32.mrb[164].mxu0 }
 0x2e4   :  { %v4178_v26 = vpop.eup %4177  ;;  %4187 = vrcp.f32 %v3105_v4  ;;  %v3659_v57 = vmul.f32 -1.442695, %v5338_v12  ;;  %v1629_v33 = vadd.f32 %v1628_v36, %v5537_v32  ;;  %v1630_v24 = vpop.f32.mrb[165].mxu1  ;;  %v5541_v36 = vld [vmem:[#allocation18_spill] sm:$0xff] }
 0x2e5   :  { %v3294_v3 = vmul.f32 %v4178_v26, %v5281_v34  ;;  %4189 = vpow2.f32 %v3658_v19  ;;  %v2303_v11 = vpop.f32.mrb[165].mxu0  ;;  %v1631_v30 = vpop.f32.mrb[166].mxu1 }
 0x2e6   :  { %v4180_v0 = vpop.eup %4179  ;;  %v2304_v48 = vpop.f32.mrb[166].mxu0  ;;  %4191 = vpow2.f32 %v3659_v57  ;;  %v2406_v34 = vadd.f32 %v2301_v31, %v1629_v33  ;;  %v1632_v17 = vadd.f32 %v1631_v30, %v5538_v39  ;;  %v5542_v30 = vld [vmem:[#allocation19_spill] sm:$0xff] }
 0x2e7   :  { %v4182_v49 = vpop.eup %4181  ;;  %3359 = vst.msk [vmem:[%s5502_s3 + $0x150] sm:$0xff] %vm3316_vm4, %v3294_v3  ;;  %v3295_v58 = vmul.f32 %v4180_v0, %v5284_v22  ;;  %v1633_v43 = vpop.f32.mrb[167].mxu1 }
 0x2e8   :  { %v2306_v10 = vpop.f32.mrb[167].mxu0  ;;  %v2737_v1 = vpop.permute.xlu1 %2736  ;;  %v3106_v8 = vadd.f32 1.0, %v4182_v49  ;;  %v2407_v60 = vadd.f32 %v2304_v48, %v1632_v17 }
 0x2e9   :  { %v4184_v47 = vpop.eup %4183  ;;  %3360 = vst.msk [vmem:[%s5502_s3 + $0x158] sm:$0xff] %vm3316_vm4, %v3295_v58  ;;  %v5353_v55 = vadd.f32 %v2737_v1, %v2406_v34  ;;  %v2742_v50 = vpop.permute.xlu0 %2741 }
 0x2ea   :  { %4193 = vrcp.f32 %v3106_v8  ;;  %v3107_v22 = vadd.f32 1.0, %v4184_v47  ;;  %v5356_v53 = vadd.f32 %v2742_v50, %v2407_v60 }
 0x2eb   :  { %v3660_v27 = vmul.f32 -1.442695, %v5353_v55  ;;  %v1636_v16 = vpop.f32.mrb[168].mxu1  ;;  %v2309_v62 = vpop.f32.mrb[168].mxu0 }
 0x2ec   :  { %v4186_v6 = vpop.eup %4185  ;;  %4195 = vrcp.f32 %v3107_v22  ;;  %v3661_v54 = vmul.f32 -1.442695, %v5356_v53  ;;  %v1637_v42 = vadd.f32 %v1636_v16, %v5539_v37  ;;  %v1638_v23 = vpop.f32.mrb[169].mxu1  ;;  %v5543_v16 = vld [vmem:[#allocation20_spill] sm:$0xff] }
 0x2ed   :  { %v3296_v41 = vmul.f32 %v4186_v6, %v5299_v13  ;;  %4197 = vpow2.f32 %v3660_v27  ;;  %v2311_v9 = vpop.f32.mrb[169].mxu0  ;;  %v1639_v56 = vpop.f32.mrb[170].mxu1 }
 0x2ee   :  { %v4188_v21 = vpop.eup %4187  ;;  %v2312_v46 = vpop.f32.mrb[170].mxu0  ;;  %4199 = vpow2.f32 %v3661_v54  ;;  %v2408_v13 = vadd.f32 %v2309_v62, %v1637_v42  ;;  %v1640_v61 = vadd.f32 %v1639_v56, %v5540_v59  ;;  %v5544_v56 = vld [vmem:[#allocation21_spill] sm:$0xff] }
 0x2ef   :  { %v4190_v63 = vpop.eup %4189  ;;  %3361 = vst.msk [vmem:[%s5502_s3 + $0x160] sm:$0xff] %vm3316_vm4, %v3296_v41  ;;  %v3297_v29 = vmul.f32 %v4188_v21, %v5302_v35  ;;  %v1641_v2 = vpop.f32.mrb[171].mxu1 }
 0x2f0   :  { %v2314_v45 = vpop.f32.mrb[171].mxu0  ;;  %v2747_v51 = vpop.permute.xlu1 %2746  ;;  %v3108_v18 = vadd.f32 1.0, %v4190_v63  ;;  %v2409_v28 = vadd.f32 %v2312_v46, %v1640_v61 }
 0x2f1   :  { %v4192_v52 = vpop.eup %4191  ;;  %3362 = vst.msk [vmem:[%s5502_s3 + $0x168] sm:$0xff] %vm3316_vm4, %v3297_v29  ;;  %v5371_v5 = vadd.f32 %v2747_v51, %v2408_v13  ;;  %v2752_v14 = vpop.permute.xlu0 %2751 }
 0x2f2   :  { %4201 = vrcp.f32 %v3108_v18  ;;  %v3109_v35 = vadd.f32 1.0, %v4192_v52  ;;  %v5374_v40 = vadd.f32 %v2752_v14, %v2409_v28 }
 0x2f3   :  { %v3662_v25 = vmul.f32 -1.442695, %v5371_v5  ;;  %v1644_v38 = vpop.f32.mrb[172].mxu1  ;;  %v2317_v4 = vpop.f32.mrb[172].mxu0 }
 0x2f4   :  { %v4194_v20 = vpop.eup %4193  ;;  %4203 = vrcp.f32 %v3109_v35  ;;  %v3663_v26 = vmul.f32 -1.442695, %v5374_v40  ;;  %v1645_v31 = vadd.f32 %v1644_v38, %v5541_v36  ;;  %v1646_v3 = vpop.f32.mrb[173].mxu1  ;;  %v5545_v38 = vld [vmem:[#allocation22_spill] sm:$0xff] }
 0x2f5   :  { %v3298_v19 = vmul.f32 %v4194_v20, %v5317_v15  ;;  %4205 = vpow2.f32 %v3662_v25  ;;  %v2319_v57 = vpop.f32.mrb[173].mxu0  ;;  %v1647_v33 = vpop.f32.mrb[174].mxu1 }
 0x2f6   :  { %v4196_v32 = vpop.eup %4195  ;;  %v2320_v24 = vpop.f32.mrb[174].mxu0  ;;  %4207 = vpow2.f32 %v3663_v26  ;;  %v2410_v15 = vadd.f32 %v2317_v4, %v1645_v31  ;;  %v1648_v48 = vadd.f32 %v1647_v33, %v5542_v30  ;;  %v5546_v33 = vld [vmem:[#allocation23_spill] sm:$0xff] }
 0x2f7   :  { %v4198_v11 = vpop.eup %4197  ;;  %3363 = vst.msk [vmem:[%s5502_s3 + $0x170] sm:$0xff] %vm3316_vm4, %v3298_v19  ;;  %v3299_v0 = vmul.f32 %v4196_v32, %v5320_v7  ;;  %v1649_v49 = vpop.f32.mrb[175].mxu1 }
 0x2f8   :  { %v2322_v58 = vpop.f32.mrb[175].mxu0  ;;  %v2757_v34 = vpop.permute.xlu1 %2756  ;;  %v3110_v39 = vadd.f32 1.0, %v4198_v11  ;;  %v2411_v10 = vadd.f32 %v2320_v24, %v1648_v48 }
 0x2f9   :  { %v4200_v17 = vpop.eup %4199  ;;  %3364 = vst.msk [vmem:[%s5502_s3 + $0x178] sm:$0xff] %vm3316_vm4, %v3299_v0  ;;  %v5389_v43 = vadd.f32 %v2757_v34, %v2410_v15  ;;  %v2762_v1 = vpop.permute.xlu0 %2761 }
 0x2fa   :  { %4209 = vrcp.f32 %v3110_v39  ;;  %v3111_v7 = vadd.f32 1.0, %v4200_v17  ;;  %v5392_v47 = vadd.f32 %v2762_v1, %v2411_v10 }
 0x2fb   :  { %v3664_v8 = vmul.f32 -1.442695, %v5389_v43  ;;  %v1652_v50 = vpop.f32.mrb[176].mxu1  ;;  %v2325_v22 = vpop.f32.mrb[176].mxu0 }
 0x2fc   :  { %v4202_v60 = vpop.eup %4201  ;;  %4211 = vrcp.f32 %v3111_v7  ;;  %v3665_v6 = vmul.f32 -1.442695, %v5392_v47  ;;  %v1653_v62 = vadd.f32 %v1652_v50, %v5543_v16  ;;  %v1654_v41 = vpop.f32.mrb[177].mxu1  ;;  %v5547_v50 = vld [vmem:[#allocation24_spill] sm:$0xff] }
 0x2fd   :  { %v3300_v27 = vmul.f32 %v4202_v60, %v5335_v44  ;;  %4213 = vpow2.f32 %v3664_v8  ;;  %v2327_v54 = vpop.f32.mrb[177].mxu0  ;;  %v1655_v42 = vpop.f32.mrb[178].mxu1 }
 0x2fe   :  { %v4204_v37 = vpop.eup %4203  ;;  %v2328_v23 = vpop.f32.mrb[178].mxu0  ;;  %4215 = vpow2.f32 %v3665_v6  ;;  %v2412_v44 = vadd.f32 %v2325_v22, %v1653_v62  ;;  %v1656_v46 = vadd.f32 %v1655_v42, %v5544_v56  ;;  %v5548_v42 = vld [vmem:[#allocation25_spill] sm:$0xff] }
 0x2ff   :  { %v4206_v9 = vpop.eup %4205  ;;  %3365 = vst.msk [vmem:[%s5502_s3 + $0x180] sm:$0xff] %vm3316_vm4, %v3300_v27  ;;  %v3301_v21 = vmul.f32 %v4204_v37, %v5338_v12  ;;  %v1657_v63 = vpop.f32.mrb[179].mxu1 }
 0x300   :  { %v2330_v29 = vpop.f32.mrb[179].mxu0  ;;  %v2767_v13 = vpop.permute.xlu1 %2766  ;;  %v3112_v59 = vadd.f32 1.0, %v4206_v9  ;;  %v2413_v45 = vadd.f32 %v2328_v23, %v1656_v46 }
 0x301   :  { %v4208_v61 = vpop.eup %4207  ;;  %3366 = vst.msk [vmem:[%s5502_s3 + $0x188] sm:$0xff] %vm3316_vm4, %v3301_v21  ;;  %v5407_v2 = vadd.f32 %v2767_v13, %v2412_v44  ;;  %v2772_v51 = vpop.permute.xlu0 %2771 }
 0x302   :  { %4217 = vrcp.f32 %v3112_v59  ;;  %v3113_v12 = vadd.f32 1.0, %v4208_v61  ;;  %v5410_v52 = vadd.f32 %v2772_v51, %v2413_v45 }
 0x303   :  { %v3666_v18 = vmul.f32 -1.442695, %v5407_v2  ;;  %v1660_v14 = vpop.f32.mrb[180].mxu1  ;;  %v2333_v35 = vpop.f32.mrb[180].mxu0 }
 0x304   :  { %v4210_v28 = vpop.eup %4209  ;;  %4219 = vrcp.f32 %v3113_v12  ;;  %v3667_v20 = vmul.f32 -1.442695, %v5410_v52  ;;  %v1661_v4 = vadd.f32 %v1660_v14, %v5545_v38  ;;  %v1662_v19 = vpop.f32.mrb[181].mxu1  ;;  %v5549_v14 = vld [vmem:[#allocation26_spill] sm:$0xff] }
 0x305   :  { %v3302_v25 = vmul.f32 %v4210_v28, %v5353_v55  ;;  %4221 = vpow2.f32 %v3666_v18  ;;  %v2335_v26 = vpop.f32.mrb[181].mxu0  ;;  %v1663_v31 = vpop.f32.mrb[182].mxu1 }
 0x306   :  { %v4212_v36 = vpop.eup %4211  ;;  %v2336_v3 = vpop.f32.mrb[182].mxu0  ;;  %4223 = vpow2.f32 %v3667_v20  ;;  %v2414_v55 = vadd.f32 %v2333_v35, %v1661_v4  ;;  %v1664_v24 = vadd.f32 %v1663_v31, %v5546_v33  ;;  %v5550_v31 = vld [vmem:[#allocation27_spill] sm:$0xff] }
 0x307   :  { %v4214_v57 = vpop.eup %4213  ;;  %3367 = vst.msk [vmem:[%s5502_s3 + $0x190] sm:$0xff] %vm3316_vm4, %v3302_v25  ;;  %v3303_v32 = vmul.f32 %v4212_v36, %v5356_v53  ;;  %v1665_v11 = vpop.f32.mrb[183].mxu1 }
 0x308   :  { %v2338_v0 = vpop.f32.mrb[183].mxu0  ;;  %v2777_v15 = vpop.permute.xlu1 %2776  ;;  %v3114_v30 = vadd.f32 1.0, %v4214_v57  ;;  %v2415_v58 = vadd.f32 %v2336_v3, %v1664_v24 }
 0x309   :  { %v4216_v48 = vpop.eup %4215  ;;  %3368 = vst.msk [vmem:[%s5502_s3 + $0x198] sm:$0xff] %vm3316_vm4, %v3303_v32  ;;  %v5425_v49 = vadd.f32 %v2777_v15, %v2414_v55  ;;  %v2782_v34 = vpop.permute.xlu0 %2781 }
 0x30a   :  { %4225 = vrcp.f32 %v3114_v30  ;;  %v3115_v53 = vadd.f32 1.0, %v4216_v48  ;;  %v5428_v17 = vadd.f32 %v2782_v34, %v2415_v58 }
 0x30b   :  { %v3668_v39 = vmul.f32 -1.442695, %v5425_v49  ;;  %v1668_v1 = vpop.f32.mrb[184].mxu1  ;;  %v2341_v7 = vpop.f32.mrb[184].mxu0 }
 0x30c   :  { %v4218_v10 = vpop.eup %4217  ;;  %4227 = vrcp.f32 %v3115_v53  ;;  %v3669_v60 = vmul.f32 -1.442695, %v5428_v17  ;;  %v1669_v22 = vadd.f32 %v1668_v1, %v5547_v50  ;;  %v1670_v27 = vpop.f32.mrb[185].mxu1 }
 0x30d   :  { %v3304_v8 = vmul.f32 %v4218_v10, %v5371_v5  ;;  %4229 = vpow2.f32 %v3668_v39  ;;  %v2343_v6 = vpop.f32.mrb[185].mxu0  ;;  %v1671_v62 = vpop.f32.mrb[186].mxu1 }
 0x30e   :  { %v4220_v16 = vpop.eup %4219  ;;  %v2344_v41 = vpop.f32.mrb[186].mxu0  ;;  %4231 = vpow2.f32 %v3669_v60  ;;  %v2416_v5 = vadd.f32 %v2341_v7, %v1669_v22  ;;  %v1672_v23 = vadd.f32 %v1671_v62, %v5548_v42 }
 0x30f   :  { %v4222_v54 = vpop.eup %4221  ;;  %3369 = vst.msk [vmem:[%s5502_s3 + $0x1a0] sm:$0xff] %vm3316_vm4, %v3304_v8  ;;  %v3305_v37 = vmul.f32 %v4220_v16, %v5374_v40  ;;  %v1673_v9 = vpop.f32.mrb[187].mxu1 }
 0x310   :  { %v2346_v21 = vpop.f32.mrb[187].mxu0  ;;  %v2787_v44 = vpop.permute.xlu1 %2786  ;;  %v3116_v56 = vadd.f32 1.0, %v4222_v54  ;;  %v2417_v29 = vadd.f32 %v2344_v41, %v1672_v23 }
 0x311   :  { %v4224_v46 = vpop.eup %4223  ;;  %3370 = vst.msk [vmem:[%s5502_s3 + $0x1a8] sm:$0xff] %vm3316_vm4, %v3305_v37  ;;  %v5443_v63 = vadd.f32 %v2787_v44, %v2416_v5  ;;  %v2792_v13 = vpop.permute.xlu0 %2791 }
 0x312   :  { %4233 = vrcp.f32 %v3116_v56  ;;  %v3117_v40 = vadd.f32 1.0, %v4224_v46  ;;  %v5446_v61 = vadd.f32 %v2792_v13, %v2417_v29 }
 0x313   :  { %v3670_v59 = vmul.f32 -1.442695, %v5443_v63  ;;  %v1676_v51 = vpop.f32.mrb[188].mxu1  ;;  %v2349_v12 = vpop.f32.mrb[188].mxu0 }
 0x314   :  { %v4226_v45 = vpop.eup %4225  ;;  %4235 = vrcp.f32 %v3117_v40  ;;  %v3671_v28 = vmul.f32 -1.442695, %v5446_v61  ;;  %v1677_v35 = vadd.f32 %v1676_v51, %v5549_v14  ;;  %v1678_v25 = vpop.f32.mrb[189].mxu1 }
 0x315   :  { %v3306_v18 = vmul.f32 %v4226_v45, %v5389_v43  ;;  %4237 = vpow2.f32 %v3670_v59  ;;  %v2351_v20 = vpop.f32.mrb[189].mxu0  ;;  %v1679_v4 = vpop.f32.mrb[190].mxu1 }
 0x316   :  { %v4228_v38 = vpop.eup %4227  ;;  %v2352_v19 = vpop.f32.mrb[190].mxu0  ;;  %4239 = vpow2.f32 %v3671_v28  ;;  %v2418_v43 = vadd.f32 %v2349_v12, %v1677_v35  ;;  %v1680_v3 = vadd.f32 %v1679_v4, %v5550_v31 }
 0x317   :  { %v4230_v26 = vpop.eup %4229  ;;  %3371 = vst.msk [vmem:[%s5502_s3 + $0x1b0] sm:$0xff] %vm3316_vm4, %v3306_v18  ;;  %v3307_v36 = vmul.f32 %v4228_v38, %v5392_v47  ;;  %v1681_v57 = vpop.f32.mrb[191].mxu1 }
 0x318   :  { %v2354_v32 = vpop.f32.mrb[191].mxu0  ;;  %v2797_v55 = vpop.permute.xlu1 %2796  ;;  %v3118_v33 = vadd.f32 1.0, %v4230_v26  ;;  %v2419_v0 = vadd.f32 %v2352_v19, %v1680_v3 }
 0x319   :  { %v4232_v24 = vpop.eup %4231  ;;  %3372 = vst.msk [vmem:[%s5502_s3 + $0x1b8] sm:$0xff] %vm3316_vm4, %v3307_v36  ;;  %v2866_v11 = vadd.f32 %v2797_v55, %v2418_v43  ;;  %v2802_v15 = vpop.permute.xlu0 %2801 }
 0x31a   :  { %4241 = vrcp.f32 %v3118_v33  ;;  %v3119_v30 = vadd.f32 1.0, %v4232_v24  ;;  %v2867_v48 = vadd.f32 %v2802_v15, %v2419_v0 }
 0x31b   :  { %v3672_v47 = vmul.f32 -1.442695, %v2866_v11 }
 0x31c   :  { %v4234_v58 = vpop.eup %4233  ;;  %4243 = vrcp.f32 %v3119_v30  ;;  %v3673_v53 = vmul.f32 -1.442695, %v2867_v48 }
 0x31d   :  { %v3308_v34 = vmul.f32 %v4234_v58, %v5407_v2  ;;  %4245 = vpow2.f32 %v3672_v47 }
 0x31e   :  { %v4236_v39 = vpop.eup %4235  ;;  %4247 = vpow2.f32 %v3673_v53 }
 0x31f   :  { %v4238_v10 = vpop.eup %4237  ;;  %3373 = vst.msk [vmem:[%s5502_s3 + $0x1c0] sm:$0xff] %vm3316_vm4, %v3308_v34  ;;  %v3309_v1 = vmul.f32 %v4236_v39, %v5410_v52 }
 0x320   :  { %v3120_v7 = vadd.f32 1.0, %v4238_v10  ;;  %v4240_v8 = vpop.eup %4239 }
 0x321   :  { %3374 = vst.msk [vmem:[%s5502_s3 + $0x1c8] sm:$0xff] %vm3316_vm4, %v3309_v1  ;;  %v3121_v2 = vadd.f32 1.0, %v4240_v8 }
 0x322   :  { %4249 = vrcp.f32 %v3120_v7 }
 0x323   :  { %4251 = vrcp.f32 %v3121_v2 }
 0x324   :  { %v4242_v60 = vpop.eup %4241 }
 0x325   :  { %v3310_v50 = vmul.f32 %v4242_v60, %v5425_v49 }
 0x326   :  { %v4244_v22 = vpop.eup %4243 }
 0x327   :  { %v4246_v27 = vpop.eup %4245  ;;  %3375 = vst.msk [vmem:[%s5502_s3 + $0x1d0] sm:$0xff] %vm3316_vm4, %v3310_v50  ;;  %v3311_v52 = vmul.f32 %v4244_v22, %v5428_v17 }
 0x328   :  { %v3122_v6 = vadd.f32 1.0, %v4246_v27  ;;  %v4248_v16 = vpop.eup %4247 }
 0x329   :  { %3376 = vst.msk [vmem:[%s5502_s3 + $0x1d8] sm:$0xff] %vm3316_vm4, %v3311_v52  ;;  %v3123_v62 = vadd.f32 1.0, %v4248_v16 }
 0x32a   :  { %4253 = vrcp.f32 %v3122_v6 }
 0x32b   :  { %4255 = vrcp.f32 %v3123_v62 }
 0x32c   :  { %v4250_v41 = vpop.eup %4249 }
 0x32d   :  { %v3312_v49 = vmul.f32 %v4250_v41, %v5443_v63  ;;  %v4252_v54 = vpop.eup %4251 }
 0x32e   :  { %v3313_v17 = vmul.f32 %v4252_v54, %v5446_v61 }
 0x32f   :  { %3377 = vst.msk [vmem:[%s5502_s3 + $0x1e0] sm:$0xff] %vm3316_vm4, %v3312_v49 }
 0x330   :  { %3378 = vst.msk [vmem:[%s5502_s3 + $0x1e8] sm:$0xff] %vm3316_vm4, %v3313_v17 }
 0x334   :  { %v4254_v37 = vpop.eup %4253 }
 0x335   :  { %v3314_v5 = vmul.f32 %v4254_v37, %v2866_v11  ;;  %v4256_v42 = vpop.eup %4255 }
 0x336   :  { %v3315_v23 = vmul.f32 %v4256_v42, %v2867_v48 }
 0x337   :  { %3379 = vst.msk [vmem:[%s5502_s3 + $0x1f0] sm:$0xff] %vm3316_vm4, %v3314_v5 }
 0x338   :  { %3380 = vst.msk [vmem:[%s5502_s3 + $0x1f8] sm:$0xff] %vm3316_vm4, %v3315_v23 }
 0x339   :  { %3385 = vsyncpa [#allocation3], 1 }

</bundles_post_ra>
